<compile_context>
chip_gen: v7x
topology: tpu7x:2x2x1
jax: 0.10.0
libtpu: 0.0.40
codegen_flags: <defaults>
</compile_context>

<pallas_src>
import math

import jax
import jax.numpy as jnp
from jax import lax
from jax.experimental import pallas as pl
from jax.experimental.pallas import tpu as pltpu


def _act(h, kind):
    if kind == "tanh":
        return jnp.tanh(h)
    if kind == "sigmoid":
        # EUP-only sigmoid: exactly equal to 1 / (1 + exp(-x)).
        return 0.5 * jnp.tanh(0.5 * h) + 0.5
    return h  # 'none' -> linear (latent layer; removed by fusion in practice)


def make_aenet_kernel(activations):
    """Kernel for a fixed stack of fully connected layers.

    Args layout: (x_ref, w0, b0, w1, b1, ..., out_ref).
      x_ref   : [tile_b, F0]    batch-major, as stored in HBM (no wrapper transpose)
      w_i     : [out_i, in_i]   PyTorch-native
      b_i     : [out_i, 1]      for all but the last layer; last bias is [1, out_last]
      out_ref : [tile_b, F_out] batch-major
    The running activation is kept as [features, tile_b] internally so the
    128-lane axis carries the batch dimension (feature dims are only 16-64).
    """
    n_layers = len(activations)

    def kernel(x_ref, *refs):
        out_ref = refs[-1]
        p = refs[:-1]
        x = x_ref[...]  # [tile_b, F0], f32

        if n_layers == 1:
            w = p[0][...]            # [out, in]
            b = p[1][...]            # [1, out]
            h = lax.dot_general(x, w, (((1,), (1,)), ((), ())),
                                preferred_element_type=jnp.float32) + b
            out_ref[...] = _act(h, activations[0]).astype(out_ref.dtype)
            return

        # First layer: contract x's feature dim against W's input dim so the
        # result is lane-dense [out0, tile_b] without an HBM transpose of x.
        w0 = p[0][...]               # [out0, in0]
        b0 = p[1][...]               # [out0, 1]
        h = lax.dot_general(w0, x, (((1,), (1,)), ((), ())),
                            preferred_element_type=jnp.float32) + b0
        h = _act(h, activations[0])

        # Middle layers stay in the [out, tile_b] layout.
        for i in range(1, n_layers - 1):
            w = p[2 * i][...]
            b = p[2 * i + 1][...]    # [out, 1] -> lane-broadcast bias add
            h = jnp.dot(w, h, preferred_element_type=jnp.float32) + b
            h = _act(h, activations[i])

        # Last layer: flip the contraction so the result is already
        # [tile_b, out_last] and can be stored batch-major directly.
        wl = p[2 * (n_layers - 1)][...]       # [out_last, in_last]
        bl = p[2 * (n_layers - 1) + 1][...]   # [1, out_last]
        h = lax.dot_general(h, wl, (((0,), (1,)), ((), ())),
                            preferred_element_type=jnp.float32) + bl
        h = _act(h, activations[n_layers - 1])
        out_ref[...] = h.astype(out_ref.dtype)

    return kernel


def init_params(key, hidden_layers_size):
    """Deterministic params mirroring AEnet.__init__ layer shapes.

    Encoder: Linear(i, j) for (i, j) in zip(sizes[:-1], sizes[1:])
    Decoder: Linear(i, j) for (i, j) in zip(sizes[:0:-1], sizes[-2::-1])
    Stored PyTorch-native: W is [out, in], b is [out].
    """
    enc_dims = list(zip(hidden_layers_size[:-1], hidden_layers_size[1:]))
    dec_dims = list(zip(hidden_layers_size[:0:-1], hidden_layers_size[-2::-1]))
    params = []
    for fan_in, fan_out in enc_dims + dec_dims:
        key, kw, kb = jax.random.split(key, 3)
        bound = 1.0 / math.sqrt(fan_in)
        w = jax.random.uniform(kw, (fan_out, fan_in), jnp.float32, -bound, bound)
        b = jax.random.uniform(kb, (fan_out,), jnp.float32, -bound, bound)
        params.append((w, b))
    return params, len(enc_dims), len(dec_dims)


def _build_layer_list(params, n_enc, n_dec):
    """Flatten to (W, b, activation) triples and fuse the latent bottleneck.

    The last encoder layer is linear and feeds directly into the first decoder
    layer, so W_f = W_d0 @ W_e_last and b_f = W_d0 @ b_e_last + b_d0 is exact
    (modulo f32 rounding reassociation).
    """
    layers = []
    for i in range(n_enc):
        w, b = params[i]
        layers.append((w, b, "tanh" if i < n_enc - 1 else "none"))
    for i in range(n_dec):
        w, b = params[n_enc + i]
        layers.append((w, b, "tanh" if i < n_dec - 1 else "sigmoid"))

    w_e, b_e, _ = layers[n_enc - 1]          # linear latent layer
    w_d, b_d, act_d = layers[n_enc]          # first decoder layer
    w_f = w_d @ w_e
    b_f = w_d @ b_e + b_d
    return layers[: n_enc - 1] + [(w_f, b_f, act_d)] + layers[n_enc + 1:]


def _choose_tile_b(B, *, max_tile=4096, min_steps=2):
    """Large batch tile (amortizes ~0.35us/step), multiple of 128, but keep
    >= min_steps grid steps so v7x's 2 TensorCores both get work."""
    if B <= 128:
        return B                                # single block == full dim (legal)
    tile = min(max_tile, 128 * pl.cdiv(B, 128))  # cover B with 128-multiples
    if pl.cdiv(B, tile) < min_steps:
        tile = max(128, 128 * pl.cdiv(pl.cdiv(B, min_steps), 128))
    return tile


def aenet_forward(x, params, n_enc, n_dec, *, max_tile_b=4096, min_grid_steps=2):
    """Full autoencoder forward in one Pallas kernel, tiled over batch.

    x: [B, F0] float32. Returns [B, F0] (batch-major; no wrapper transposes).
    """
    B, F0 = x.shape
    layers = _build_layer_list(params, n_enc, n_dec)
    n_layers = len(layers)
    activations = tuple(act for _, _, act in layers)
    F_out = int(layers[-1][0].shape[0])

    flat = []
    for li, (w, b, _) in enumerate(layers):
        flat.append(w)
        if li == n_layers - 1:
            flat.append(b.reshape(1, -1))   # last bias: [1, out] (batch-major add)
        else:
            flat.append(b.reshape(-1, 1))   # [out, 1] -> lane-broadcast bias add

    tile_b = _choose_tile_b(B, max_tile=max_tile_b, min_steps=min_grid_steps)
    grid = (pl.cdiv(B, tile_b),)

    def _const_spec(a):
        # Full-array, grid-invariant block: stays resident, no per-step DMA.
        nd = a.ndim
        return pl.BlockSpec(a.shape, lambda i, _nd=nd: (0,) * _nd)

    in_specs = [pl.BlockSpec((tile_b, F0), lambda i: (i, 0))]
    in_specs += [_const_spec(a) for a in flat]
    out_spec = pl.BlockSpec((tile_b, F_out), lambda i: (i, 0))

    flops = 2 * B * sum(int(w.shape[0]) * int(w.shape[1]) for w, _, _ in layers)
    transcendentals = B * sum(int(w.shape[0]) for w, _, _ in layers)
    bytes_accessed = 4 * (x.size + B * F_out + sum(int(a.size) for a in flat))

    # Scoped-VMEM budget: in/out tiles are double-buffered, params resident,
    # plus slack for intermediates. Default scoped limit is 16 MiB (v5e) /
    # 32 MiB (v6e/v7x), so set it explicitly for large tiles.
    max_feat = max(F0, F_out, *(int(w.shape[0]) for w, _, _ in layers))
    tile_bytes = 4 * tile_b * max_feat
    param_bytes = 4 * sum(int(a.size) for a in flat)
    vmem_limit = min(48 << 20,
                     max(32 << 20, 6 * tile_bytes + 2 * param_bytes + (4 << 20)))

    kernel = make_aenet_kernel(activations)
    out = pl.pallas_call(
        kernel,
        out_shape=jax.ShapeDtypeStruct((B, F_out), x.dtype),
        grid=grid,
        in_specs=in_specs,
        out_specs=out_spec,
        compiler_params=pltpu.CompilerParams(
            dimension_semantics=("parallel",),
            vmem_limit_bytes=int(vmem_limit)),
        cost_estimate=pl.CostEstimate(
            flops=flops,
            transcendentals=transcendentals,
            bytes_accessed=bytes_accessed),
    )(x, *flat)
    return out


def aenet_reference(x, params, n_enc, n_dec):
    """Pure-JAX reference matching the PyTorch forward (unfused, stock sigmoid)."""
    h = x
    for i in range(n_enc):
        w, b = params[i]
        h = h @ w.T + b
        if i < n_enc - 1:
            h = jnp.tanh(h)
    for i in range(n_dec):
        w, b = params[n_enc + i]
        h = h @ w.T + b
        if i < n_dec - 1:
            h = jnp.tanh(h)
        else:
            h = jax.nn.sigmoid(h)
    return h.astype(x.dtype)


if __name__ == "__main__":
    # hidden_layers_size per the module docstring: last entry is the latent dim.
    hidden_layers_size = [64, 32, 16]
    batch = 1024  # small, but exercises the batch grid (tile=512 -> 2 parallel steps)

    key = jax.random.PRNGKey(0)
    key, kx = jax.random.split(key)
    x = jax.random.uniform(kx, (batch, hidden_layers_size[0]), jnp.float32)

    params, n_enc, n_dec = init_params(key, hidden_layers_size)

    out = aenet_forward(x, params, n_enc, n_dec)
    out = jax.block_until_ready(out)

    ref = aenet_reference(x, params, n_enc, n_dec)
    assert out.shape == (batch, hidden_layers_size[0])
    assert jnp.allclose(out, ref, atol=1e-4, rtol=1e-4), (
        "Pallas output mismatch vs reference")

    print("KERNEL_OK")
</pallas_src>

<mosaic_0001>
module attributes {stable_mosaic.version = 11 : i64} {
  func.func @kernel(%arg0: i32, %arg1: memref<512x64xf32, #tpu.memory_space<vmem>>, %arg2: memref<32x64xf32, #tpu.memory_space<vmem>>, %arg3: memref<32x1xf32, #tpu.memory_space<vmem>>, %arg4: memref<32x32xf32, #tpu.memory_space<vmem>>, %arg5: memref<32x1xf32, #tpu.memory_space<vmem>>, %arg6: memref<64x32xf32, #tpu.memory_space<vmem>>, %arg7: memref<1x64xf32, #tpu.memory_space<vmem>>, %arg8: memref<512x64xf32, #tpu.memory_space<vmem>>) attributes {dimension_semantics = [#tpu.dimension_semantics<parallel>], iteration_bounds = array<i64: 2>, scalar_prefetch = 0 : i64, scratch_operands = 0 : i64, tpu.core_type = #tpu.core_type<tc>, window_params = [{transform_indices = @transform_0, window_bounds = array<i64: 512, 64>}, {pipeline_mode = #tpu.pipeline_mode<synchronous>, transform_indices = @transform_1, window_bounds = array<i64: 32, 64>}, {pipeline_mode = #tpu.pipeline_mode<synchronous>, transform_indices = @transform_2, window_bounds = array<i64: 32, 1>}, {pipeline_mode = #tpu.pipeline_mode<synchronous>, transform_indices = @transform_3, window_bounds = array<i64: 32, 32>}, {pipeline_mode = #tpu.pipeline_mode<synchronous>, transform_indices = @transform_4, window_bounds = array<i64: 32, 1>}, {pipeline_mode = #tpu.pipeline_mode<synchronous>, transform_indices = @transform_5, window_bounds = array<i64: 64, 32>}, {pipeline_mode = #tpu.pipeline_mode<synchronous>, transform_indices = @transform_6, window_bounds = array<i64: 1, 64>}, {transform_indices = @transform_7, window_bounds = array<i64: 512, 64>}]} {
    %c0 = arith.constant 0 : index
    %c0_0 = arith.constant 0 : index
    %0 = vector.load %arg1[%c0, %c0_0] : memref<512x64xf32, #tpu.memory_space<vmem>>, vector<512x64xf32>
    %c0_1 = arith.constant 0 : index
    %c0_2 = arith.constant 0 : index
    %1 = vector.load %arg2[%c0_1, %c0_2] : memref<32x64xf32, #tpu.memory_space<vmem>>, vector<32x64xf32>
    %c0_3 = arith.constant 0 : index
    %c0_4 = arith.constant 0 : index
    %2 = vector.load %arg3[%c0_3, %c0_4] : memref<32x1xf32, #tpu.memory_space<vmem>>, vector<32x1xf32>
    %cst = arith.constant dense<0.000000e+00> : vector<32x512xf32>
    %3 = tpu.matmul %1, %0, %cst {dimension_numbers = #tpu.dot_dimension_numbers<[1], [1], [0], [0], [0, 0, 1, 0], [], []>} : vector<32x64xf32>, vector<512x64xf32>, vector<32x512xf32> -> vector<32x512xf32>
    %4 = vector.broadcast %2 : vector<32x1xf32> to vector<32x512xf32>
    %5 = arith.addf %3, %4 : vector<32x512xf32>
    %6 = math.tanh %5 : vector<32x512xf32>
    %c0_5 = arith.constant 0 : index
    %c0_6 = arith.constant 0 : index
    %7 = vector.load %arg4[%c0_5, %c0_6] : memref<32x32xf32, #tpu.memory_space<vmem>>, vector<32x32xf32>
    %c0_7 = arith.constant 0 : index
    %c0_8 = arith.constant 0 : index
    %8 = vector.load %arg5[%c0_7, %c0_8] : memref<32x1xf32, #tpu.memory_space<vmem>>, vector<32x1xf32>
    %cst_9 = arith.constant dense<0.000000e+00> : vector<32x512xf32>
    %9 = tpu.matmul %7, %6, %cst_9 {dimension_numbers = #tpu.dot_dimension_numbers<[1], [0], [0], [1], [0, 0, 1, 1], [], []>} : vector<32x32xf32>, vector<32x512xf32>, vector<32x512xf32> -> vector<32x512xf32>
    %10 = vector.broadcast %8 : vector<32x1xf32> to vector<32x512xf32>
    %11 = arith.addf %9, %10 : vector<32x512xf32>
    %12 = math.tanh %11 : vector<32x512xf32>
    %c0_10 = arith.constant 0 : index
    %c0_11 = arith.constant 0 : index
    %13 = vector.load %arg6[%c0_10, %c0_11] : memref<64x32xf32, #tpu.memory_space<vmem>>, vector<64x32xf32>
    %c0_12 = arith.constant 0 : index
    %c0_13 = arith.constant 0 : index
    %14 = vector.load %arg7[%c0_12, %c0_13] : memref<1x64xf32, #tpu.memory_space<vmem>>, vector<1x64xf32>
    %cst_14 = arith.constant dense<0.000000e+00> : vector<512x64xf32>
    %15 = tpu.matmul %12, %13, %cst_14 {dimension_numbers = #tpu.dot_dimension_numbers<[0], [1], [1], [0], [0, 1, 1, 0], [], []>} : vector<32x512xf32>, vector<64x32xf32>, vector<512x64xf32> -> vector<512x64xf32>
    %16 = vector.broadcast %14 : vector<1x64xf32> to vector<512x64xf32>
    %17 = arith.addf %15, %16 : vector<512x64xf32>
    %cst_15 = arith.constant 5.000000e-01 : f32
    %18 = vector.broadcast %cst_15 : f32 to vector<512x64xf32>
    %19 = arith.mulf %18, %17 : vector<512x64xf32>
    %20 = math.tanh %19 : vector<512x64xf32>
    %cst_16 = arith.constant 5.000000e-01 : f32
    %21 = vector.broadcast %cst_16 : f32 to vector<512x64xf32>
    %22 = arith.mulf %21, %20 : vector<512x64xf32>
    %cst_17 = arith.constant 5.000000e-01 : f32
    %23 = vector.broadcast %cst_17 : f32 to vector<512x64xf32>
    %24 = arith.addf %22, %23 : vector<512x64xf32>
    %c0_18 = arith.constant 0 : index
    %c0_19 = arith.constant 0 : index
    %25 = vector.load %arg8[%c0_18, %c0_19] : memref<512x64xf32, #tpu.memory_space<vmem>>, vector<512x64xf32>
    tpu.vector_store %arg8[%c0_18, %c0_19], %24 {strides = array<i32>} : memref<512x64xf32, #tpu.memory_space<vmem>>, vector<512x64xf32>,
    return
  }
  func.func @transform_0(%arg0: i32) -> (i32, i32) {
    %c0_i32 = arith.constant 0 : i32
    %c0_i32_0 = arith.constant 0 : i32
    return %arg0, %c0_i32 : i32, i32
  }
  func.func @transform_1(%arg0: i32) -> (i32, i32) {
    %c0_i32 = arith.constant 0 : i32
    %c0_i32_0 = arith.constant 0 : i32
    %c0_i32_1 = arith.constant 0 : i32
    return %c0_i32, %c0_i32_0 : i32, i32
  }
  func.func @transform_2(%arg0: i32) -> (i32, i32) {
    %c0_i32 = arith.constant 0 : i32
    %c0_i32_0 = arith.constant 0 : i32
    %c0_i32_1 = arith.constant 0 : i32
    return %c0_i32, %c0_i32_0 : i32, i32
  }
  func.func @transform_3(%arg0: i32) -> (i32, i32) {
    %c0_i32 = arith.constant 0 : i32
    %c0_i32_0 = arith.constant 0 : i32
    %c0_i32_1 = arith.constant 0 : i32
    return %c0_i32, %c0_i32_0 : i32, i32
  }
  func.func @transform_4(%arg0: i32) -> (i32, i32) {
    %c0_i32 = arith.constant 0 : i32
    %c0_i32_0 = arith.constant 0 : i32
    %c0_i32_1 = arith.constant 0 : i32
    return %c0_i32, %c0_i32_0 : i32, i32
  }
  func.func @transform_5(%arg0: i32) -> (i32, i32) {
    %c0_i32 = arith.constant 0 : i32
    %c0_i32_0 = arith.constant 0 : i32
    %c0_i32_1 = arith.constant 0 : i32
    return %c0_i32, %c0_i32_0 : i32, i32
  }
  func.func @transform_6(%arg0: i32) -> (i32, i32) {
    %c0_i32 = arith.constant 0 : i32
    %c0_i32_0 = arith.constant 0 : i32
    %c0_i32_1 = arith.constant 0 : i32
    return %c0_i32, %c0_i32_0 : i32, i32
  }
  func.func @transform_7(%arg0: i32) -> (i32, i32) {
    %c0_i32 = arith.constant 0 : i32
    %c0_i32_0 = arith.constant 0 : i32
    return %arg0, %c0_i32 : i32, i32
  }
}

</mosaic_0001>

<bundles_post_ra>
// kernel: tpu_custom_call.1
= control target key start
LH: loop header
LB: loop body
LE: loop exit
PB: predicated region body
PF: predicated region fallthrough
CT: control target
= control target key end

     0   :  { %s2946_s24 = smov 0   ;;  %s3513_s0 = inlined_call_operand.vmem [shape: f32[1024,64], index: 0, kind: input, shape index: {}]   ;;  %s3514_s1 = inlined_call_operand.vmem [shape: f32[32,64], index: 1, kind: input, shape index: {}]   ;;  %s3515_s2 = inlined_call_operand.vmem [shape: f32[32,1], index: 2, kind: input, shape index: {}]   ;;  %s3516_s3 = inlined_call_operand.vmem [shape: f32[32,32], index: 3, kind: input, shape index: {}]   ;;  %s3517_s4 = inlined_call_operand.vmem [shape: f32[32,1], index: 4, kind: input, shape index: {}]   ;;  %s3518_s5 = inlined_call_operand.vmem [shape: f32[64,32], index: 5, kind: input, shape index: {}]   ;;  %s3519_s6 = inlined_call_operand.vmem [shape: f32[1,64], index: 6, kind: input, shape index: {}]   ;;  %s3520_s7 = inlined_call_operand.vmem [shape: f32[1024,64], index: 7, kind: output, shape index: {}]  }
   0x1 LB: > { %s2128_s25 = sadd.s32 4294967295, %s2902_s24   ;;  %p2132_p0 = scmp.ge.s32.totalorder %s2902_s24, 1  ;;  %s2902_s24 = sphi %s2946_s24, %s17_s24  }
   0x2   : > { %p238_p1 = scmp.lt.s32.totalorder %s2902_s24, 3 }
   0x4   : > { %p239_p2 = pnand %p2132_p0, %p238_p1 }
   0x5   : > { %s2133_s26 = sshll.u32 (!%p239_p2), %s2128_s25, 6  ;;  %vm374_vm0 = vcmask (!%p239_p2), 523264   ;;  %v2957_v0 = vld [vmem:[%s3514_s1] sm:$0xff] (!%p239_p2)  ;;  %v2904_v21 = vmov (!%p239_p2), 0   ;;  %v352_v27 = vld [vmem:[%s3515_s2 + $0x10] sm:$0xff] (!%p239_p2)  ;;  %v351_v30 = vld [vmem:[%s3515_s2 + $0x8] sm:$0xff] (!%p239_p2) }
   0x6   : > { %242 = sbr.rel (%p239_p2) target bundleno = 1070 (0x42e), region = 48  ;;  %p271_p3 = scmp.lt.s32.totalorder (!%p239_p2), %s2133_s26, 127  ;;  %2324 = vmatprep.mubr.msk.f32.mxu1 (!%p239_p2), %vm374_vm0, %v2957_v0  ;;  %vm2973_vm1 = vmpackc.low (!%p239_p2), %vm374_vm0, %vm374_vm0  ;;  %2702 = vset.pattern.permute.xlu0 (!%p239_p2), %v2904_v21  ;;  %v350_v26 = vld [vmem:[%s3515_s2] sm:$0xff] (!%p239_p2)  ;;  %v353_v31 = vld [vmem:[%s3515_s2 + $0x18] sm:$0xff] (!%p239_p2)  ;;  %v2905_v1 = vmov (!%p239_p2), 0.0   ;;  %vm801_vm2 = vcmask (!%p239_p2), 261120  }
   0x7   : > { %2703 = vset.pattern.permute.xlu1 (!%p239_p2), %v2904_v21  ;;  %356 = vperm.xlu0 (!%p239_p2), %2702, %v350_v26   ;;  %v777_v34 = vld [vmem:[%s3517_s4] sm:$0xff] (!%p239_p2)  ;;  %v778_v35 = vld [vmem:[%s3517_s4 + $0x8] sm:$0xff] (!%p239_p2)  ;;  %v779_v40 = vld [vmem:[%s3517_s4 + $0x10] sm:$0xff] (!%p239_p2) }
   0x8   : > { %366 = vperm.xlu1 (!%p239_p2), %2703, %v352_v27   ;;  %v780_v41 = vld [vmem:[%s3517_s4 + $0x18] sm:$0xff] (!%p239_p2)  ;;  %878 = vmatprep.mubr.f32.mxu0 (!%p239_p2), %v2905_v1  ;;  %vm3204_vm3 = vmpackc.low (!%p239_p2), %vm801_vm2, %vm801_vm2 }
   0xb   : > { %361 = vperm.xlu0 (!%p239_p2), %2702, %v351_v30  }
   0xc   : > { %371 = vperm.xlu1 (!%p239_p2), %2703, %v353_v31  }
   0xd   : > { %s3526_s26 = smov (!%p271_p3, %s2133_s26), 127 }
   0xe   : > { %s2134_s29 = sshll.u32 %s3526_s26, 3 }
   0xf   : > { %s2969_s9 = scalar_lea.vmem %s3513_s0, %s2134_s29  ;;  %783 = vperm.xlu0 %2702, %v777_v34   ;;  %s3320_s20 = scalar_lea.vmem %s3520_s7, %s2134_s29 }
  0x10   : > { %v298_v2 = vld [vmem:[%s2969_s9 + $0x80] sm:$0xff]  ;;  %v299_v3 = vld [vmem:[%s2969_s9 + $0x88] sm:$0xff]  ;;  %v300_v7 = vld [vmem:[%s2969_s9 + $0x90] sm:$0xff]  ;;  %788 = vperm.xlu1 %2703, %v778_v35  }
  0x11   : > { %v282_v4 = vld [vmem:[%s2969_s9] sm:$0xff]  ;;  %v2556_v5 = vpack.c.bf16 %v299_v3, %v298_v2  ;;  %v283_v6 = vld [vmem:[%s2969_s9 + $0x8] sm:$0xff]  ;;  %v301_v8 = vld [vmem:[%s2969_s9 + $0x98] sm:$0xff] }
  0x12   : > { %v2559_v9 = vpack.c.bf16 %v283_v6, %v282_v4  ;;  %v2562_v10 = vpack.c.bf16 %v301_v8, %v300_v7  ;;  %v284_v11 = vld [vmem:[%s2969_s9 + $0x10] sm:$0xff]  ;;  %v285_v12 = vld [vmem:[%s2969_s9 + $0x18] sm:$0xff]  ;;  %v302_v13 = vld [vmem:[%s2969_s9 + $0xa0] sm:$0xff] }
  0x13   : > { %2558 = vmatprep.subr.msk.bf16.mxu1 %vm2973_vm1, %v2556_v5  ;;  %v303_v14 = vld [vmem:[%s2969_s9 + $0xa8] sm:$0xff]  ;;  %v2565_v15 = vpack.c.bf16 %v285_v12, %v284_v11  ;;  %v286_v17 = vld [vmem:[%s2969_s9 + $0x20] sm:$0xff]  ;;  %v304_v19 = vld [vmem:[%s2969_s9 + $0xb0] sm:$0xff]  ;;  %793 = vperm.xlu0 %2702, %v779_v40  }
  0x14   : > { %2561 = vmatpush3.bf16.xpose.msk.msra.mxu1 %vm2973_vm1, %v2559_v9  ;;  %v2568_v16 = vpack.c.bf16 %v303_v14, %v302_v13  ;;  %v287_v18 = vld [vmem:[%s2969_s9 + $0x28] sm:$0xff]  ;;  %v305_v20 = vld [vmem:[%s2969_s9 + $0xb8] sm:$0xff]  ;;  %v288_v24 = vld [vmem:[%s2969_s9 + $0x30] sm:$0xff]  ;;  %798 = vperm.xlu1 %2703, %v780_v41  }
  0x15   : > { %2564 = vmatprep.subr.msk.bf16.mxu1 %vm2973_vm1, %v2562_v10  ;;  %v2571_v22 = vpack.c.bf16 %v287_v18, %v286_v17  ;;  %v2574_v23 = vpack.c.bf16 %v305_v20, %v304_v19  ;;  %v289_v25 = vld [vmem:[%s2969_s9 + $0x38] sm:$0xff]  ;;  %v306_v28 = vld [vmem:[%s2969_s9 + $0xc0] sm:$0xff]  ;;  %v307_v29 = vld [vmem:[%s2969_s9 + $0xc8] sm:$0xff] }
  0x16   : > { %v2577_v32 = vpack.c.bf16 %v289_v25, %v288_v24  ;;  %v2580_v33 = vpack.c.bf16 %v307_v29, %v306_v28  ;;  %v290_v36 = vld [vmem:[%s2969_s9 + $0x40] sm:$0xff]  ;;  %v291_v37 = vld [vmem:[%s2969_s9 + $0x48] sm:$0xff]  ;;  %v308_v38 = vld [vmem:[%s2969_s9 + $0xd0] sm:$0xff] }
  0x17   : > { %v309_v39 = vld [vmem:[%s2969_s9 + $0xd8] sm:$0xff]  ;;  %v2583_v42 = vpack.c.bf16 %v291_v37, %v290_v36  ;;  %v292_v44 = vld [vmem:[%s2969_s9 + $0x50] sm:$0xff]  ;;  %v310_v46 = vld [vmem:[%s2969_s9 + $0xe0] sm:$0xff] }
  0x18   : > { %v2586_v43 = vpack.c.bf16 %v309_v39, %v308_v38  ;;  %v293_v45 = vld [vmem:[%s2969_s9 + $0x58] sm:$0xff]  ;;  %v311_v47 = vld [vmem:[%s2969_s9 + $0xe8] sm:$0xff]  ;;  %v294_v50 = vld [vmem:[%s2969_s9 + $0x60] sm:$0xff] }
  0x19   : > { %v2589_v48 = vpack.c.bf16 %v293_v45, %v292_v44  ;;  %v2592_v49 = vpack.c.bf16 %v311_v47, %v310_v46  ;;  %v295_v51 = vld [vmem:[%s2969_s9 + $0x68] sm:$0xff]  ;;  %v312_v52 = vld [vmem:[%s2969_s9 + $0xf0] sm:$0xff]  ;;  %v313_v53 = vld [vmem:[%s2969_s9 + $0xf8] sm:$0xff] }
  0x1a   : > { %v2595_v54 = vpack.c.bf16 %v295_v51, %v294_v50  ;;  %v2598_v55 = vpack.c.bf16 %v313_v53, %v312_v52  ;;  %v296_v56 = vld [vmem:[%s2969_s9 + $0x70] sm:$0xff]  ;;  %v297_v57 = vld [vmem:[%s2969_s9 + $0x78] sm:$0xff]  ;;  %v330_v58 = vld [vmem:[%s2969_s9 + $0x180] sm:$0xff] }
  0x1b   : > { %v331_v59 = vld [vmem:[%s2969_s9 + $0x188] sm:$0xff]  ;;  %v2601_v60 = vpack.c.bf16 %v297_v57, %v296_v56  ;;  %v314_v62 = vld [vmem:[%s2969_s9 + $0x100] sm:$0xff]  ;;  %v332_v2 = vld [vmem:[%s2969_s9 + $0x190] sm:$0xff] }
  0x1c   : > { %2567 = vmatpush3.bf16.xpose.msk.msra.mxu1 %vm2973_vm1, %v2565_v15  ;;  %v2604_v61 = vpack.c.bf16 %v331_v59, %v330_v58  ;;  %v315_v63 = vld [vmem:[%s2969_s9 + $0x108] sm:$0xff]  ;;  %v333_v3 = vld [vmem:[%s2969_s9 + $0x198] sm:$0xff]  ;;  %v3087_v7 = vld [vmem:[%s3514_s1 + $0x10] sm:$0xff] }
  0x1d   : > { %2570 = vmatprep.subr.msk.bf16.mxu1 %vm2973_vm1, %v2568_v16  ;;  %v2607_v4 = vpack.c.bf16 %v315_v63, %v314_v62  ;;  %v3076_v5 = vld [vmem:[%s3514_s1 + $0x8] sm:$0xff]  ;;  %v2610_v6 = vpack.c.bf16 %v333_v3, %v332_v2  ;;  %v316_v8 = vld [vmem:[%s2969_s9 + $0x110] sm:$0xff]  ;;  %v317_v9 = vld [vmem:[%s2969_s9 + $0x118] sm:$0xff] }
  0x1e   : > { %v334_v10 = vld [vmem:[%s2969_s9 + $0x1a0] sm:$0xff]  ;;  %v335_v11 = vld [vmem:[%s2969_s9 + $0x1a8] sm:$0xff]  ;;  %v2613_v12 = vpack.c.bf16 %v317_v9, %v316_v8  ;;  %v349_v13 = vld [vmem:[%s3514_s1 + $0x18] sm:$0xff] }
  0x1f   : > { %v2616_v14 = vpack.c.bf16 %v335_v11, %v334_v10  ;;  %v318_v15 = vld [vmem:[%s2969_s9 + $0x120] sm:$0xff]  ;;  %v319_v16 = vld [vmem:[%s2969_s9 + $0x128] sm:$0xff]  ;;  %v336_v17 = vld [vmem:[%s2969_s9 + $0x1b0] sm:$0xff] }
  0x20   : > { %v337_v18 = vld [vmem:[%s2969_s9 + $0x1b8] sm:$0xff]  ;;  %v2619_v19 = vpack.c.bf16 %v319_v16, %v318_v15  ;;  %v320_v21 = vld [vmem:[%s2969_s9 + $0x130] sm:$0xff]  ;;  %v339_v24 = vld [vmem:[%s2969_s9 + $0x1c8] sm:$0xff] }
  0x21   : > { %v2622_v20 = vpack.c.bf16 %v337_v18, %v336_v17  ;;  %v322_v27 = vld [vmem:[%s2969_s9 + $0x140] sm:$0xff]  ;;  %v323_v28 = vld [vmem:[%s2969_s9 + $0x148] sm:$0xff]  ;;  %v340_v29 = vld [vmem:[%s2969_s9 + $0x1d0] sm:$0xff] }
  0x22   : > { %v341_v30 = vld [vmem:[%s2969_s9 + $0x1d8] sm:$0xff]  ;;  %v2631_v31 = vpack.c.bf16 %v323_v28, %v322_v27  ;;  %v342_v35 = vld [vmem:[%s2969_s9 + $0x1e0] sm:$0xff]  ;;  %v343_v36 = vld [vmem:[%s2969_s9 + $0x1e8] sm:$0xff] }
  0x23   : > { %v325_v34 = vld [vmem:[%s2969_s9 + $0x158] sm:$0xff]  ;;  %v2640_v38 = vpack.c.bf16 %v343_v36, %v342_v35  ;;  %v326_v39 = vld [vmem:[%s2969_s9 + $0x160] sm:$0xff]  ;;  %v327_v40 = vld [vmem:[%s2969_s9 + $0x168] sm:$0xff] }
  0x24   : > { %2573 = vmatpush3.bf16.xpose.msk.msra.mxu1 %vm2973_vm1, %v2571_v22  ;;  %v321_v22 = vld [vmem:[%s2969_s9 + $0x138] sm:$0xff]  ;;  %v344_v41 = vld [vmem:[%s2969_s9 + $0x1f0] sm:$0xff]  ;;  %v773_v17 = vld [vmem:[%s3516_s3] sm:$0xff] }
  0x25   : > { %2576 = vmatprep.subr.msk.bf16.mxu1 %vm2973_vm1, %v2574_v23  ;;  %v338_v23 = vld [vmem:[%s2969_s9 + $0x1c0] sm:$0xff]  ;;  %v2625_v25 = vpack.c.bf16 %v321_v22, %v320_v21  ;;  %v328_v45 = vld [vmem:[%s2969_s9 + $0x170] sm:$0xff]  ;;  %v329_v46 = vld [vmem:[%s2969_s9 + $0x178] sm:$0xff] }
  0x26   : > { %v2628_v26 = vpack.c.bf16 %v339_v24, %v338_v23  ;;  %v2649_v47 = vpack.c.bf16 %v329_v46, %v328_v45  ;;  %v774_v18 = vld [vmem:[%s3516_s3 + $0x8] sm:$0xff] }
  0x2c   : > { %2579 = vmatpush3.bf16.xpose.msk.msra.mxu1 %vm2973_vm1, %v2577_v32  ;;  %v2634_v32 = vpack.c.bf16 %v341_v30, %v340_v29 }
  0x2d   : > { %2582 = vmatprep.subr.msk.bf16.mxu1 %vm2973_vm1, %v2580_v33  ;;  %v324_v33 = vld [vmem:[%s2969_s9 + $0x150] sm:$0xff] }
  0x2e   : > { %v2637_v37 = vpack.c.bf16 %v325_v34, %v324_v33 }
  0x34   : > { %2585 = vmatpush3.bf16.xpose.msk.msra.mxu1 %vm2973_vm1, %v2583_v42  ;;  %v345_v42 = vld [vmem:[%s2969_s9 + $0x1f8] sm:$0xff] }
  0x35   : > { %2588 = vmatprep.subr.msk.bf16.mxu1 %vm2973_vm1, %v2586_v43  ;;  %v2643_v43 = vpack.c.bf16 %v327_v40, %v326_v39  ;;  %v2646_v44 = vpack.c.bf16 %v345_v42, %v344_v41 }
  0x3c   : > { %2591 = vmatpush3.bf16.xpose.msk.msra.mxu1 %vm2973_vm1, %v2589_v48 }
  0x3d   : > { %2594 = vmatprep.subr.msk.bf16.mxu1 %vm2973_vm1, %v2592_v49 }
  0x44   : > { %2597 = vmatpush3.bf16.xpose.msk.msra.mxu1 %vm2973_vm1, %v2595_v54 }
  0x45   : > { %2600 = vmatprep.subr.msk.bf16.mxu1 %vm2973_vm1, %v2598_v55 }
  0x4c   : > { %2603 = vmatpush3.bf16.xpose.msk.msra.mxu1 %vm2973_vm1, %v2601_v60 }
  0x4d   : > { %2606 = vmatprep.subr.msk.bf16.mxu1 %vm2973_vm1, %v2604_v61 }
  0x53   : > { %2325 = vmatmul.mubr.msk.f32.vlgmr.msra.gmra.mrb[0].mxu1 %vm374_vm0, %v2957_v0 }
  0x54   : > { %2609 = vmatpush3.bf16.xpose.msk.msra.mxu1 %vm2973_vm1, %v2607_v4  ;;  %2326 = vmatprep.mubr.msk.f32.mxu1 %vm374_vm0, %v3076_v5 }
  0x55   : > { %2612 = vmatprep.subr.msk.bf16.mxu1 %vm2973_vm1, %v2610_v6 }
  0x57   : > { %2327 = vmatmul.mubr.msk.f32.gmra.mrb[2].mxu1 %vm374_vm0, %v3076_v5 }
  0x58   : > { %2328 = vmatprep.mubr.msk.f32.mxu1 %vm374_vm0, %v3087_v7 }
  0x5b   : > { %2329 = vmatmul.mubr.msk.f32.gmra.mrb[4].mxu1 %vm374_vm0, %v3087_v7 }
  0x5c   : > { %2615 = vmatpush3.bf16.xpose.msk.msra.mxu1 %vm2973_vm1, %v2613_v12  ;;  %2330 = vmatprep.mubr.msk.f32.mxu1 %vm374_vm0, %v349_v13 }
  0x5d   : > { %2618 = vmatprep.subr.msk.bf16.mxu1 %vm2973_vm1, %v2616_v14 }
  0x5f   : > { %2331 = vmatmul.mubr.msk.f32.gmra.mrb[6].mxu1 %vm374_vm0, %v349_v13 }
  0x60   : > { %2364 = vmatprep.mubr.msk.f32.mxu1 %vm374_vm0, %v2957_v0 }
  0x64   : > { %2621 = vmatpush3.bf16.xpose.msk.msra.mxu1 %vm2973_vm1, %v2619_v19  ;;  %v775_v19 = vld [vmem:[%s3516_s3 + $0x10] sm:$0xff] }
  0x65   : > { %2624 = vmatprep.subr.msk.bf16.mxu1 %vm2973_vm1, %v2622_v20  ;;  %v776_v20 = vld [vmem:[%s3516_s3 + $0x18] sm:$0xff] }
  0x6c   : > { %2627 = vmatpush3.bf16.xpose.msk.msra.mxu1 %vm2973_vm1, %v2625_v25 }
  0x6d   : > { %2630 = vmatprep.subr.msk.bf16.mxu1 %vm2973_vm1, %v2628_v26 }
  0x74   : > { %2633 = vmatpush3.bf16.xpose.msk.msra.mxu1 %vm2973_vm1, %v2631_v31 }
  0x75   : > { %2636 = vmatprep.subr.msk.bf16.mxu1 %vm2973_vm1, %v2634_v32 }
  0x7c   : > { %2639 = vmatpush3.bf16.xpose.msk.msra.mxu1 %vm2973_vm1, %v2637_v37 }
  0x7d   : > { %2642 = vmatprep.subr.msk.bf16.mxu1 %vm2973_vm1, %v2640_v38 }
  0x84   : > { %2645 = vmatpush3.bf16.xpose.msk.msra.mxu1 %vm2973_vm1, %v2643_v43 }
  0x85   : > { %2648 = vmatprep.subr.msk.bf16.mxu1 %vm2973_vm1, %v2646_v44 }
  0x87   : > { %v367_v56 = vpop.permute.xlu1 %366 }
  0x8b   : > { %v372_v62 = vpop.permute.xlu1 %371 }
  0x8c   : > { %2651 = vmatpush3.bf16.xpose.msk.msra.mxu1 %vm2973_vm1, %v2649_v47 }
  0x93   : > { %2365 = vmatmul.mubr.msk.f32.vlgmr.msra.gmra.mrb[8].mxu1 %vm374_vm0, %v2957_v0  ;;  %v357_v0 = vpop.permute.xlu0 %356 }
  0x94   : > { %2366 = vmatprep.mubr.msk.f32.mxu1 %vm374_vm0, %v3076_v5 }
  0x97   : > { %2367 = vmatmul.mubr.msk.f32.gmra.mrb[10].mxu1 %vm374_vm0, %v3076_v5  ;;  %v362_v52 = vpop.permute.xlu0 %361 }
  0x98   : > { %2368 = vmatprep.mubr.msk.f32.mxu1 %vm374_vm0, %v3087_v7 }
  0x9b   : > { %2369 = vmatmul.mubr.msk.f32.gmra.mrb[12].mxu1 %vm374_vm0, %v3087_v7 }
  0x9c   : > { %2370 = vmatprep.mubr.msk.f32.mxu1 %vm374_vm0, %v349_v13 }
  0x9f   : > { %2371 = vmatmul.mubr.msk.f32.gmra.mrb[14].mxu1 %vm374_vm0, %v349_v13 }
  0xa0   : > { %967 = vmatprep.mubr.f32.mxu1 %v2905_v1 }
 0x126   : > { %v645_v48 = vpop.f32.mrb[0].mxu1 }
 0x127   : > { %v646_v49 = vadd.f32 %v645_v48, %v357_v0  ;;  %v647_v50 = vpop.f32.mrb[1].mxu1  ;;  %v1008_v48 = vld [vmem:[%s3518_s5] sm:$0xff] }
 0x128   : > { %v648_v51 = vadd.f32 %v647_v50, %v357_v0 }
 0x129   : > { %2704 = vtanh.f32 %v646_v49  ;;  %v1009_v49 = vld [vmem:[%s3518_s5 + $0x8] sm:$0xff] }
 0x12a   : > { %v651_v53 = vpop.f32.mrb[2].mxu1  ;;  %2706 = vtanh.f32 %v648_v51  ;;  %v2668_v51 = vpack.c.bf16 %v1009_v49, %v1008_v48 }
 0x12b   : > { %v652_v54 = vadd.f32 %v651_v53, %v362_v52  ;;  %v653_v55 = vpop.f32.mrb[3].mxu1 }
 0x12c   : > { %v654_v57 = vadd.f32 %v653_v55, %v362_v52  ;;  %v1013_v55 = vld [vmem:[%s3518_s5 + $0x28] sm:$0xff] }
 0x12d   : > { %2708 = vtanh.f32 %v652_v54  ;;  %v1012_v54 = vld [vmem:[%s3518_s5 + $0x20] sm:$0xff] }
 0x12e   : > { %2710 = vtanh.f32 %v654_v57  ;;  %v657_v58 = vpop.f32.mrb[4].mxu1  ;;  %v784_v57 = vpop.permute.xlu0 %783 }
 0x12f   : > { %v658_v59 = vadd.f32 %v657_v58, %v367_v56  ;;  %v659_v60 = vpop.f32.mrb[5].mxu1 }
 0x130   : > { %v660_v61 = vadd.f32 %v659_v60, %v367_v56 }
 0x131   : > { %2712 = vtanh.f32 %v658_v59 }
 0x132   : > { %v663_v63 = vpop.f32.mrb[6].mxu1  ;;  %2714 = vtanh.f32 %v660_v61 }
 0x133   : > { %v664_v2 = vadd.f32 %v663_v63, %v372_v62  ;;  %v665_v3 = vpop.f32.mrb[7].mxu1  ;;  %v2705_v5 = vpop.eup %2704 }
 0x134   : > { %v666_v4 = vadd.f32 %v665_v3, %v372_v62  ;;  %v2707_v6 = vpop.eup %2706 }
 0x135   : > { %2716 = vtanh.f32 %v664_v2 }
 0x136   : > { %2718 = vtanh.f32 %v666_v4 }
 0x137   : > { %v2709_v7 = vpop.eup %2708 }
 0x138   : > { %v2711_v8 = vpop.eup %2710  ;;  %v2654_v9 = vpack.c.bf16 %v2709_v7, %v2705_v5  ;;  %v794_v5 = vpop.permute.xlu0 %793  ;;  %v1014_v7 = vld [vmem:[%s3518_s5 + $0x30] sm:$0xff] }
 0x139   : > { %v2652_v10 = vpack.c.bf16 %v2711_v8, %v2707_v6  ;;  %v1015_v8 = vld [vmem:[%s3518_s5 + $0x38] sm:$0xff] }
 0x13b   : > { %2653 = vmatprep.subr.bf16.mxu0 %v2652_v10  ;;  %v2713_v11 = vpop.eup %2712 }
 0x13c   : > { %2655 = vmatpush1.bf16.msra.mxu0 %v2654_v9  ;;  %v2715_v12 = vpop.eup %2714 }
 0x13f   : > { %v2717_v13 = vpop.eup %2716 }
 0x140   : > { %v2719_v14 = vpop.eup %2718  ;;  %v2658_v15 = vpack.c.bf16 %v2717_v13, %v2713_v11  ;;  %v2686_v11 = vpack.c.bf16 %v1015_v8, %v1014_v7 }
 0x141   : > { %v2656_v16 = vpack.c.bf16 %v2719_v14, %v2715_v12 }
 0x143   : > { %2657 = vmatprep.subr.bf16.mxu0 %v2656_v16 }
 0x144   : > { %2659 = vmatpush1.bf16.msra.mxu0 %v2658_v15 }
 0x145   : > { %2670 = vmatprep.subr.msk.bf16.mxu0 %vm3204_vm3, %v2668_v51 }
 0x147   : > { %2209 = vmatmul.mubr.msk.f32.vlgmr.msra.gmra.mrb[0].mxu0 %vm801_vm2, %v773_v17 }
 0x148   : > { %884 = vmatprep.mubr.f32.mxu0 %v2905_v1 }
 0x14b   : > { %2210 = vmatmul.mubr.msk.f32.gmra.mrb[2].mxu0 %vm801_vm2, %v774_v18 }
 0x14c   : > { %890 = vmatprep.mubr.f32.mxu0 %v2905_v1 }
 0x14d   : > { %2673 = vmatpush3.bf16.xpose.msk.msra.mxu0 %vm3204_vm3, %v2668_v51 }
 0x14f   : > { %2211 = vmatmul.mubr.msk.f32.gmra.mrb[4].mxu0 %vm801_vm2, %v775_v19 }
 0x150   : > { %896 = vmatprep.mubr.f32.mxu0 %v2905_v1 }
 0x153   : > { %2212 = vmatmul.mubr.msk.f32.gmra.mrb[6].mxu0 %vm801_vm2, %v776_v20 }
 0x166   : > { %v734_v21 = vpop.f32.mrb[8].mxu1 }
 0x167   : > { %v735_v22 = vadd.f32 %v734_v21, %v357_v0  ;;  %v736_v23 = vpop.f32.mrb[9].mxu1 }
 0x168   : > { %v737_v24 = vadd.f32 %v736_v23, %v357_v0 }
 0x169   : > { %2720 = vtanh.f32 %v735_v22 }
 0x16a   : > { %v740_v25 = vpop.f32.mrb[10].mxu1  ;;  %2722 = vtanh.f32 %v737_v24 }
 0x16b   : > { %v741_v26 = vadd.f32 %v740_v25, %v362_v52  ;;  %v742_v27 = vpop.f32.mrb[11].mxu1 }
 0x16c   : > { %v743_v28 = vadd.f32 %v742_v27, %v362_v52  ;;  %v1011_v52 = vld [vmem:[%s3518_s5 + $0x18] sm:$0xff] }
 0x16d   : > { %2724 = vtanh.f32 %v741_v26 }
 0x16e   : > { %2726 = vtanh.f32 %v743_v28  ;;  %v746_v29 = vpop.f32.mrb[12].mxu1 }
 0x16f   : > { %v747_v30 = vadd.f32 %v746_v29, %v367_v56  ;;  %v748_v31 = vpop.f32.mrb[13].mxu1 }
 0x170   : > { %v749_v32 = vadd.f32 %v748_v31, %v367_v56  ;;  %v2680_v56 = vpack.c.bf16 %v1013_v55, %v1012_v54 }
 0x171   : > { %2728 = vtanh.f32 %v747_v30 }
 0x172   : > { %v752_v33 = vpop.f32.mrb[14].mxu1  ;;  %2730 = vtanh.f32 %v749_v32 }
 0x173   : > { %v753_v34 = vadd.f32 %v752_v33, %v372_v62  ;;  %v754_v35 = vpop.f32.mrb[15].mxu1  ;;  %v2721_v37 = vpop.eup %2720 }
 0x174   : > { %v755_v36 = vadd.f32 %v754_v35, %v372_v62  ;;  %v2723_v38 = vpop.eup %2722  ;;  %v789_v62 = vpop.permute.xlu1 %788 }
 0x175   : > { %2732 = vtanh.f32 %v753_v34 }
 0x176   : > { %2734 = vtanh.f32 %v755_v36 }
 0x177   : > { %v2725_v39 = vpop.eup %2724 }
 0x178   : > { %v2727_v40 = vpop.eup %2726  ;;  %v2662_v41 = vpack.c.bf16 %v2725_v39, %v2721_v37  ;;  %v799_v13 = vpop.permute.xlu1 %798 }
 0x179   : > { %v2660_v42 = vpack.c.bf16 %v2727_v40, %v2723_v38 }
 0x17b   : > { %2661 = vmatprep.subr.bf16.mxu1 %v2660_v42  ;;  %v2729_v43 = vpop.eup %2728 }
 0x17c   : > { %2663 = vmatpush1.bf16.msra.mxu1 %v2662_v41  ;;  %v2731_v44 = vpop.eup %2730 }
 0x17f   : > { %v2733_v45 = vpop.eup %2732 }
 0x180   : > { %v2735_v46 = vpop.eup %2734  ;;  %v2666_v47 = vpack.c.bf16 %v2733_v45, %v2729_v43 }
 0x181   : > { %v2664_v0 = vpack.c.bf16 %v2735_v46, %v2731_v44 }
 0x183   : > { %2665 = vmatprep.subr.bf16.mxu1 %v2664_v0 }
 0x184   : > { %2667 = vmatpush1.bf16.msra.mxu1 %v2666_v47 }
 0x187   : > { %2213 = vmatmul.mubr.msk.f32.vlgmr.msra.gmra.mrb[16].mxu1 %vm801_vm2, %v773_v17 }
 0x188   : > { %973 = vmatprep.mubr.f32.mxu1 %v2905_v1 }
 0x18b   : > { %2214 = vmatmul.mubr.msk.f32.gmra.mrb[18].mxu1 %vm801_vm2, %v774_v18 }
 0x18c   : > { %979 = vmatprep.mubr.f32.mxu1 %v2905_v1 }
 0x18f   : > { %2215 = vmatmul.mubr.msk.f32.gmra.mrb[20].mxu1 %vm801_vm2, %v775_v19 }
 0x190   : > { %985 = vmatprep.mubr.f32.mxu1 %v2905_v1  ;;  %v1010_v1 = vld [vmem:[%s3518_s5 + $0x10] sm:$0xff] }
 0x191   : > { %v2674_v53 = vpack.c.bf16 %v1011_v52, %v1010_v1 }
 0x193   : > { %2216 = vmatmul.mubr.msk.f32.gmra.mrb[22].mxu1 %vm801_vm2, %v776_v20  ;;  %2676 = vmatprep.subr.msk.bf16.mxu0 %vm3204_vm3, %v2674_v53 }
 0x194   : > { %2679 = vmatpush3.bf16.xpose.msk.msra.mxu0 %vm3204_vm3, %v2674_v53 }
 0x195   : > { %2682 = vmatprep.subr.msk.bf16.mxu0 %vm3204_vm3, %v2680_v56 }
 0x19c   : > { %2685 = vmatpush3.bf16.xpose.msk.msra.mxu0 %vm3204_vm3, %v2680_v56 }
 0x19d   : > { %2688 = vmatprep.subr.msk.bf16.mxu0 %vm3204_vm3, %v2686_v11 }
 0x1a4   : > { %2691 = vmatpush3.bf16.xpose.msk.msra.mxu0 %vm3204_vm3, %v2686_v11 }
 0x21a   : > { %v880_v58 = vpop.f32.mrb[0].mxu0 }
 0x21b   : > { %v881_v59 = vadd.f32 %v880_v58, %v784_v57  ;;  %v882_v60 = vpop.f32.mrb[1].mxu0 }
 0x21c   : > { %v883_v61 = vadd.f32 %v882_v60, %v784_v57 }
 0x21d   : > { %2736 = vtanh.f32 %v881_v59 }
 0x21e   : > { %2738 = vtanh.f32 %v883_v61  ;;  %v886_v63 = vpop.f32.mrb[2].mxu0 }
 0x21f   : > { %v887_v2 = vadd.f32 %v886_v63, %v789_v62  ;;  %v888_v3 = vpop.f32.mrb[3].mxu0 }
 0x220   : > { %v889_v4 = vadd.f32 %v888_v3, %v789_v62 }
 0x221   : > { %2740 = vtanh.f32 %v887_v2 }
 0x222   : > { %2742 = vtanh.f32 %v889_v4  ;;  %v892_v6 = vpop.f32.mrb[4].mxu0 }
 0x223   : > { %v893_v9 = vadd.f32 %v892_v6, %v794_v5  ;;  %v894_v10 = vpop.f32.mrb[5].mxu0 }
 0x224   : > { %v895_v12 = vadd.f32 %v894_v10, %v794_v5 }
 0x225   : > { %2744 = vtanh.f32 %v893_v9 }
 0x226   : > { %2746 = vtanh.f32 %v895_v12  ;;  %v898_v14 = vpop.f32.mrb[6].mxu0 }
 0x227   : > { %v2737_v15 = vpop.eup %2736  ;;  %v899_v16 = vadd.f32 %v898_v14, %v799_v13  ;;  %v900_v17 = vpop.f32.mrb[7].mxu0 }
 0x228   : > { %v2739_v18 = vpop.eup %2738  ;;  %v901_v19 = vadd.f32 %v900_v17, %v799_v13  ;;  %1023 = vxpose.xlu0.b32.start [1/4] (short) %v2737_v15, 128 }
 0x229   : > { %2748 = vtanh.f32 %v899_v16  ;;  %1055 = vxpose.xlu1.b32.start [1/4] (short) %v2739_v18, 128 }
 0x22a   : > { %2750 = vtanh.f32 %v901_v19 }
 0x22b   : > { %v2741_v20 = vpop.eup %2740 }
 0x22c   : > { %v2743_v21 = vpop.eup %2742  ;;  %1024 = vxpose.xlu0.b32.cont [2/4] (short) %v2741_v20, 128 }
 0x22d   : > { %1056 = vxpose.xlu1.b32.cont [2/4] (short) %v2743_v21, 128 }
 0x22f   : > { %v2745_v22 = vpop.eup %2744 }
 0x230   : > { %v2747_v23 = vpop.eup %2746  ;;  %1025 = vxpose.xlu0.b32.cont [3/4] (short) %v2745_v22, 128 }
 0x231   : > { %1057 = vxpose.xlu1.b32.cont [3/4] (short) %v2747_v23, 128 }
 0x233   : > { %v2749_v24 = vpop.eup %2748 }
 0x234   : > { %v2751_v25 = vpop.eup %2750  ;;  %1026 = vxpose.xlu0.b32.end [4/4] (short) %v2749_v24, 128 }
 0x235   : > { %1058 = vxpose.xlu1.b32.end [4/4] (short) %v2751_v25, 128 }
 0x25a   : > { %v969_v26 = vpop.f32.mrb[16].mxu1 }
 0x25b   : > { %v970_v27 = vadd.f32 %v969_v26, %v784_v57  ;;  %v971_v28 = vpop.f32.mrb[17].mxu1 }
 0x25c   : > { %v972_v29 = vadd.f32 %v971_v28, %v784_v57 }
 0x25d   : > { %2752 = vtanh.f32 %v970_v27 }
 0x25e   : > { %2754 = vtanh.f32 %v972_v29  ;;  %v975_v30 = vpop.f32.mrb[18].mxu1 }
 0x25f   : > { %v976_v31 = vadd.f32 %v975_v30, %v789_v62  ;;  %v977_v32 = vpop.f32.mrb[19].mxu1 }
 0x260   : > { %v978_v33 = vadd.f32 %v977_v32, %v789_v62 }
 0x261   : > { %2756 = vtanh.f32 %v976_v31 }
 0x262   : > { %2758 = vtanh.f32 %v978_v33  ;;  %v981_v34 = vpop.f32.mrb[20].mxu1 }
 0x263   : > { %v982_v35 = vadd.f32 %v981_v34, %v794_v5  ;;  %v983_v36 = vpop.f32.mrb[21].mxu1 }
 0x264   : > { %v984_v37 = vadd.f32 %v983_v36, %v794_v5 }
 0x265   : > { %2760 = vtanh.f32 %v982_v35 }
 0x266   : > { %2762 = vtanh.f32 %v984_v37  ;;  %v987_v38 = vpop.f32.mrb[22].mxu1 }
 0x267   : > { %v2753_v39 = vpop.eup %2752  ;;  %v988_v40 = vadd.f32 %v987_v38, %v799_v13  ;;  %v989_v41 = vpop.f32.mrb[23].mxu1 }
 0x268   : > { %v2755_v42 = vpop.eup %2754  ;;  %v990_v43 = vadd.f32 %v989_v41, %v799_v13  ;;  %1087 = vxpose.xlu0.b32.start [1/4] (short) %v2753_v39, 128 }
 0x269   : > { %2764 = vtanh.f32 %v988_v40  ;;  %1119 = vxpose.xlu1.b32.start [1/4] (short) %v2755_v42, 128 }
 0x26a   : > { %2766 = vtanh.f32 %v990_v43 }
 0x26b   : > { %v2757_v44 = vpop.eup %2756 }
 0x26c   : > { %v2759_v45 = vpop.eup %2758  ;;  %1088 = vxpose.xlu0.b32.cont [2/4] (short) %v2757_v44, 128 }
 0x26d   : > { %1120 = vxpose.xlu1.b32.cont [2/4] (short) %v2759_v45, 128 }
 0x26f   : > { %v2761_v46 = vpop.eup %2760 }
 0x270   : > { %v2763_v47 = vpop.eup %2762  ;;  %1089 = vxpose.xlu0.b32.cont [3/4] (short) %v2761_v46, 128 }
 0x271   : > { %1121 = vxpose.xlu1.b32.cont [3/4] (short) %v2763_v47, 128 }
 0x273   : > { %v2765_v0 = vpop.eup %2764 }
 0x274   : > { %v2767_v48 = vpop.eup %2766  ;;  %1090 = vxpose.xlu0.b32.end [4/4] (short) %v2765_v0, 128 }
 0x275   : > { %1122 = vxpose.xlu1.b32.end [4/4] (short) %v2767_v48, 128 }
 0x2a8   : > { %v1039_v49 = vpop.trf.xlu0 }
 0x2a9   : > { %2460 = vmatprep.mubr.msk.f32.mxu0 %vm801_vm2, %v1039_v49  ;;  %v1071_v50 = vpop.trf.xlu1  ;;  %v3309_v49 = vld [vmem:[%s3519_s6] ss:$0 sm:$0xff] }
 0x2ac   : > { %v1040_v51 = vpop.trf.xlu0 }
 0x2ad   : > { %2461 = vmatmul.mubr.msk.f32.vlgmr.msra.gmra.mrb[8].mxu0 %vm801_vm2, %v1040_v51  ;;  %v1072_v1 = vpop.trf.xlu1 }
 0x2b0   : > { %v1041_v52 = vpop.trf.xlu0 }
 0x2b1   : > { %2463 = vmatprep.mubr.msk.f32.mxu0 %vm801_vm2, %v1041_v52  ;;  %v1073_v53 = vpop.trf.xlu1 }
 0x2b4   : > { %v1042_v54 = vpop.trf.xlu0 }
 0x2b5   : > { %2464 = vmatmul.mubr.msk.f32.gmra.mrb[10].mxu0 %vm801_vm2, %v1042_v54  ;;  %v1074_v55 = vpop.trf.xlu1 }
 0x2b8   : > { %v1043_v56 = vpop.trf.xlu0 }
 0x2b9   : > { %2466 = vmatprep.mubr.msk.f32.mxu0 %vm801_vm2, %v1043_v56  ;;  %v1075_v57 = vpop.trf.xlu1 }
 0x2bc   : > { %v1044_v58 = vpop.trf.xlu0 }
 0x2bd   : > { %2467 = vmatmul.mubr.msk.f32.gmra.mrb[12].mxu0 %vm801_vm2, %v1044_v58  ;;  %v1076_v59 = vpop.trf.xlu1 }
 0x2c0   : > { %v1045_v60 = vpop.trf.xlu0 }
 0x2c1   : > { %2469 = vmatprep.mubr.msk.f32.mxu0 %vm801_vm2, %v1045_v60  ;;  %v1077_v61 = vpop.trf.xlu1 }
 0x2c4   : > { %v1046_v62 = vpop.trf.xlu0 }
 0x2c5   : > { %2470 = vmatmul.mubr.msk.f32.gmra.mrb[14].mxu0 %vm801_vm2, %v1046_v62  ;;  %v1078_v63 = vpop.trf.xlu1 }
 0x2c8   : > { %v1047_v2 = vpop.trf.xlu0 }
 0x2c9   : > { %2472 = vmatprep.mubr.msk.f32.mxu0 %vm801_vm2, %v1047_v2  ;;  %v1079_v3 = vpop.trf.xlu1 }
 0x2cc   : > { %v1048_v4 = vpop.trf.xlu0 }
 0x2cd   : > { %2473 = vmatmul.mubr.msk.f32.gmra.mrb[16].mxu0 %vm801_vm2, %v1048_v4  ;;  %v1080_v5 = vpop.trf.xlu1 }
 0x2d0   : > { %v1049_v6 = vpop.trf.xlu0 }
 0x2d1   : > { %2475 = vmatprep.mubr.msk.f32.mxu0 %vm801_vm2, %v1049_v6  ;;  %v1081_v7 = vpop.trf.xlu1 }
 0x2d4   : > { %v1050_v8 = vpop.trf.xlu0 }
 0x2d5   : > { %2476 = vmatmul.mubr.msk.f32.gmra.mrb[18].mxu0 %vm801_vm2, %v1050_v8  ;;  %v1082_v9 = vpop.trf.xlu1 }
 0x2d8   : > { %v1051_v10 = vpop.trf.xlu0 }
 0x2d9   : > { %2478 = vmatprep.mubr.msk.f32.mxu0 %vm801_vm2, %v1051_v10  ;;  %v1083_v11 = vpop.trf.xlu1 }
 0x2dc   : > { %v1052_v12 = vpop.trf.xlu0 }
 0x2dd   : > { %2479 = vmatmul.mubr.msk.f32.gmra.mrb[20].mxu0 %vm801_vm2, %v1052_v12  ;;  %v1084_v13 = vpop.trf.xlu1 }
 0x2e0   : > { %v1053_v14 = vpop.trf.xlu0 }
 0x2e1   : > { %2481 = vmatprep.mubr.msk.f32.mxu0 %vm801_vm2, %v1053_v14  ;;  %v1085_v15 = vpop.trf.xlu1 }
 0x2e4   : > { %v1054_v16 = vpop.trf.xlu0 }
 0x2e5   : > { %2482 = vmatmul.mubr.msk.f32.gmra.mrb[22].mxu0 %vm801_vm2, %v1054_v16  ;;  %v1086_v17 = vpop.trf.xlu1 }
 0x2e6   : > { %2484 = vmatprep.mubr.msk.f32.mxu0 %vm801_vm2, %v1071_v50 }
 0x2e8   : > { %v1103_v18 = vpop.trf.xlu0 }
 0x2e9   : > { %2485 = vmatmul.mubr.msk.f32.gmra.mrb[24].mxu0 %vm801_vm2, %v1072_v1  ;;  %v1135_v19 = vpop.trf.xlu1 }
 0x2ea   : > { %2487 = vmatprep.mubr.msk.f32.mxu0 %vm801_vm2, %v1073_v53 }
 0x2ec   : > { %v1104_v20 = vpop.trf.xlu0 }
 0x2ed   : > { %2488 = vmatmul.mubr.msk.f32.gmra.mrb[26].mxu0 %vm801_vm2, %v1074_v55  ;;  %v1136_v21 = vpop.trf.xlu1 }
 0x2ee   : > { %2490 = vmatprep.mubr.msk.f32.mxu0 %vm801_vm2, %v1075_v57 }
 0x2f0   : > { %v1105_v22 = vpop.trf.xlu0 }
 0x2f1   : > { %2491 = vmatmul.mubr.msk.f32.gmra.mrb[28].mxu0 %vm801_vm2, %v1076_v59  ;;  %v1137_v24 = vpop.trf.xlu1 }
 0x2f2   : > { %2493 = vmatprep.mubr.msk.f32.mxu0 %vm801_vm2, %v1077_v61 }
 0x2f4   : > { %v1106_v23 = vpop.trf.xlu0 }
 0x2f5   : > { %2494 = vmatmul.mubr.msk.f32.gmra.mrb[30].mxu0 %vm801_vm2, %v1078_v63  ;;  %v1138_v26 = vpop.trf.xlu1 }
 0x2f6   : > { %2496 = vmatprep.mubr.msk.f32.mxu0 %vm801_vm2, %v1079_v3 }
 0x2f8   : > { %v1107_v25 = vpop.trf.xlu0 }
 0x2f9   : > { %2497 = vmatmul.mubr.msk.f32.gmra.mrb[32].mxu0 %vm801_vm2, %v1080_v5  ;;  %v1139_v29 = vpop.trf.xlu1 }
 0x2fa   : > { %2499 = vmatprep.mubr.msk.f32.mxu0 %vm801_vm2, %v1081_v7 }
 0x2fc   : > { %v1108_v27 = vpop.trf.xlu0 }
 0x2fd   : > { %2500 = vmatmul.mubr.msk.f32.gmra.mrb[34].mxu0 %vm801_vm2, %v1082_v9  ;;  %v1140_v31 = vpop.trf.xlu1 }
 0x2fe   : > { %2502 = vmatprep.mubr.msk.f32.mxu0 %vm801_vm2, %v1083_v11 }
 0x300   : > { %v1109_v28 = vpop.trf.xlu0 }
 0x301   : > { %2503 = vmatmul.mubr.msk.f32.gmra.mrb[36].mxu0 %vm801_vm2, %v1084_v13  ;;  %v1141_v34 = vpop.trf.xlu1 }
 0x302   : > { %2505 = vmatprep.mubr.msk.f32.mxu0 %vm801_vm2, %v1085_v15 }
 0x304   : > { %v1110_v30 = vpop.trf.xlu0 }
 0x305   : > { %2506 = vmatmul.mubr.msk.f32.gmra.mrb[38].mxu0 %vm801_vm2, %v1086_v17  ;;  %v1142_v36 = vpop.trf.xlu1 }
 0x306   : > { %2508 = vmatprep.mubr.msk.f32.mxu0 %vm801_vm2, %v1103_v18 }
 0x308   : > { %v1111_v32 = vpop.trf.xlu0 }
 0x309   : > { %2509 = vmatmul.mubr.msk.f32.gmra.mrb[40].mxu0 %vm801_vm2, %v1104_v20  ;;  %v1143_v39 = vpop.trf.xlu1 }
 0x30a   : > { %2511 = vmatprep.mubr.msk.f32.mxu0 %vm801_vm2, %v1105_v22 }
 0x30c   : > { %v1112_v33 = vpop.trf.xlu0 }
 0x30d   : > { %2512 = vmatmul.mubr.msk.f32.gmra.mrb[42].mxu0 %vm801_vm2, %v1106_v23  ;;  %v1144_v41 = vpop.trf.xlu1 }
 0x30e   : > { %2514 = vmatprep.mubr.msk.f32.mxu0 %vm801_vm2, %v1107_v25 }
 0x310   : > { %v1113_v35 = vpop.trf.xlu0 }
 0x311   : > { %2515 = vmatmul.mubr.msk.f32.gmra.mrb[44].mxu0 %vm801_vm2, %v1108_v27  ;;  %v1145_v44 = vpop.trf.xlu1 }
 0x312   : > { %2517 = vmatprep.mubr.msk.f32.mxu0 %vm801_vm2, %v1109_v28 }
 0x314   : > { %v1114_v37 = vpop.trf.xlu0 }
 0x315   : > { %2518 = vmatmul.mubr.msk.f32.gmra.mrb[46].mxu0 %vm801_vm2, %v1110_v30  ;;  %v1146_v45 = vpop.trf.xlu1 }
 0x316   : > { %2520 = vmatprep.mubr.msk.f32.mxu0 %vm801_vm2, %v1111_v32 }
 0x318   : > { %v1115_v38 = vpop.trf.xlu0 }
 0x319   : > { %2521 = vmatmul.mubr.msk.f32.gmra.mrb[48].mxu0 %vm801_vm2, %v1112_v33  ;;  %v1147_v46 = vpop.trf.xlu1 }
 0x31a   : > { %2523 = vmatprep.mubr.msk.f32.mxu0 %vm801_vm2, %v1113_v35 }
 0x31c   : > { %v1116_v40 = vpop.trf.xlu0 }
 0x31d   : > { %2524 = vmatmul.mubr.msk.f32.gmra.mrb[50].mxu0 %vm801_vm2, %v1114_v37  ;;  %v1148_v47 = vpop.trf.xlu1 }
 0x31e   : > { %2526 = vmatprep.mubr.msk.f32.mxu0 %vm801_vm2, %v1115_v38 }
 0x320   : > { %v1117_v42 = vpop.trf.xlu0 }
 0x321   : > { %2527 = vmatmul.mubr.msk.f32.gmra.mrb[52].mxu0 %vm801_vm2, %v1116_v40  ;;  %v1149_v0 = vpop.trf.xlu1 }
 0x322   : > { %2529 = vmatprep.mubr.msk.f32.mxu0 %vm801_vm2, %v1117_v42 }
 0x324   : > { %v1118_v43 = vpop.trf.xlu0 }
 0x325   : > { %2530 = vmatmul.mubr.msk.f32.gmra.mrb[54].mxu0 %vm801_vm2, %v1118_v43  ;;  %v1150_v48 = vpop.trf.xlu1 }
 0x326   : > { %2532 = vmatprep.mubr.msk.f32.mxu0 %vm801_vm2, %v1135_v19 }
 0x329   : > { %2533 = vmatmul.mubr.msk.f32.gmra.mrb[56].mxu0 %vm801_vm2, %v1136_v21 }
 0x32a   : > { %2535 = vmatprep.mubr.msk.f32.mxu0 %vm801_vm2, %v1137_v24 }
 0x32d   : > { %2536 = vmatmul.mubr.msk.f32.gmra.mrb[58].mxu0 %vm801_vm2, %v1138_v26 }
 0x32e   : > { %2538 = vmatprep.mubr.msk.f32.mxu0 %vm801_vm2, %v1139_v29 }
 0x331   : > { %2539 = vmatmul.mubr.msk.f32.gmra.mrb[60].mxu0 %vm801_vm2, %v1140_v31 }
 0x332   : > { %2541 = vmatprep.mubr.msk.f32.mxu0 %vm801_vm2, %v1141_v34 }
 0x335   : > { %2542 = vmatmul.mubr.msk.f32.gmra.mrb[62].mxu0 %vm801_vm2, %v1142_v36 }
 0x336   : > { %2544 = vmatprep.mubr.msk.f32.mxu0 %vm801_vm2, %v1143_v39 }
 0x339   : > { %2545 = vmatmul.mubr.msk.f32.gmra.mrb[64].mxu0 %vm801_vm2, %v1144_v41 }
 0x33a   : > { %2547 = vmatprep.mubr.msk.f32.mxu0 %vm801_vm2, %v1145_v44 }
 0x33d   : > { %2548 = vmatmul.mubr.msk.f32.gmra.mrb[66].mxu0 %vm801_vm2, %v1146_v45 }
 0x33e   : > { %2550 = vmatprep.mubr.msk.f32.mxu0 %vm801_vm2, %v1147_v46 }
 0x341   : > { %2551 = vmatmul.mubr.msk.f32.gmra.mrb[68].mxu0 %vm801_vm2, %v1148_v47 }
 0x342   : > { %2553 = vmatprep.mubr.msk.f32.mxu0 %vm801_vm2, %v1149_v0 }
 0x345   : > { %2554 = vmatmul.mubr.msk.f32.gmra.mrb[70].mxu0 %vm801_vm2, %v1150_v48 }
 0x380   : > { %v2462_v50 = vpop.f32.mrb[8].mxu0 }
 0x381   : > { %v1439_v51 = vadd.f32 %v2462_v50, %v3309_v49  ;;  %v1433_v1 = vpop.f32.mrb[9].mxu0 }
 0x382   : > { %v1434_v52 = vadd.f32 %v3309_v49, %v1433_v1 }
 0x383   : > { %v1753_v53 = vmul.f32 0.5, %v1439_v51 }
 0x384   : > { %v1752_v54 = vmul.f32 0.5, %v1434_v52 }
 0x385   : > { %2768 = vtanh.f32 %v1753_v53 }
 0x386   : > { %2770 = vtanh.f32 %v1752_v54 }
 0x388   : > { %v2465_v55 = vpop.f32.mrb[10].mxu0 }
 0x389   : > { %v1449_v56 = vadd.f32 %v2465_v55, %v3309_v49  ;;  %v1443_v57 = vpop.f32.mrb[11].mxu0 }
 0x38a   : > { %v1444_v58 = vadd.f32 %v3309_v49, %v1443_v57 }
 0x38b   : > { %v1755_v59 = vmul.f32 0.5, %v1449_v56 }
 0x38c   : > { %v1754_v60 = vmul.f32 0.5, %v1444_v58 }
 0x38d   : > { %2772 = vtanh.f32 %v1755_v59 }
 0x38e   : > { %2774 = vtanh.f32 %v1754_v60 }
 0x38f   : > { %v2769_v61 = vpop.eup %2768 }
 0x390   : > { %v2771_v62 = vpop.eup %2770  ;;  %v1881_v63 = vmul.f32 0.5, %v2769_v61  ;;  %v2468_v2 = vpop.f32.mrb[12].mxu0 }
 0x391   : > { %v1880_v3 = vmul.f32 0.5, %v2771_v62  ;;  %v1459_v4 = vadd.f32 %v2468_v2, %v3309_v49  ;;  %v1453_v5 = vpop.f32.mrb[13].mxu0 }
 0x392   : > { %v1945_v6 = vadd.f32 0.5, %v1881_v63  ;;  %v1454_v7 = vadd.f32 %v3309_v49, %v1453_v5 }
 0x393   : > { %v1944_v8 = vadd.f32 0.5, %v1880_v3  ;;  %v1757_v9 = vmul.f32 0.5, %v1459_v4 }
 0x394   : > { %2009 = vst.msk [vmem:[%s3320_s20 + $0x8] sm:$0xff] %vm374_vm0, %v1945_v6  ;;  %v1756_v10 = vmul.f32 0.5, %v1454_v7 }
 0x395   : > { %2008 = vst.msk [vmem:[%s3320_s20] sm:$0xff] %vm374_vm0, %v1944_v8  ;;  %2776 = vtanh.f32 %v1757_v9 }
 0x396   : > { %2778 = vtanh.f32 %v1756_v10 }
 0x397   : > { %v2773_v11 = vpop.eup %2772 }
 0x398   : > { %v2775_v12 = vpop.eup %2774  ;;  %v1883_v13 = vmul.f32 0.5, %v2773_v11  ;;  %v2471_v14 = vpop.f32.mrb[14].mxu0 }
 0x399   : > { %v1882_v15 = vmul.f32 0.5, %v2775_v12  ;;  %v1469_v16 = vadd.f32 %v2471_v14, %v3309_v49  ;;  %v1463_v17 = vpop.f32.mrb[15].mxu0 }
 0x39a   : > { %v1947_v18 = vadd.f32 0.5, %v1883_v13  ;;  %v1464_v19 = vadd.f32 %v3309_v49, %v1463_v17 }
 0x39b   : > { %v1946_v20 = vadd.f32 0.5, %v1882_v15  ;;  %v1759_v21 = vmul.f32 0.5, %v1469_v16 }
 0x39c   : > { %2011 = vst.msk [vmem:[%s3320_s20 + $0x18] sm:$0xff] %vm374_vm0, %v1947_v18  ;;  %v1758_v22 = vmul.f32 0.5, %v1464_v19 }
 0x39d   : > { %2010 = vst.msk [vmem:[%s3320_s20 + $0x10] sm:$0xff] %vm374_vm0, %v1946_v20  ;;  %2780 = vtanh.f32 %v1759_v21 }
 0x39e   : > { %2782 = vtanh.f32 %v1758_v22 }
 0x39f   : > { %v2777_v23 = vpop.eup %2776 }
 0x3a0   : > { %v2779_v24 = vpop.eup %2778  ;;  %v1885_v25 = vmul.f32 0.5, %v2777_v23  ;;  %v2474_v26 = vpop.f32.mrb[16].mxu0 }
 0x3a1   : > { %v1884_v27 = vmul.f32 0.5, %v2779_v24  ;;  %v1479_v28 = vadd.f32 %v2474_v26, %v3309_v49  ;;  %v1473_v29 = vpop.f32.mrb[17].mxu0 }
 0x3a2   : > { %v1949_v30 = vadd.f32 0.5, %v1885_v25  ;;  %v1474_v31 = vadd.f32 %v3309_v49, %v1473_v29 }
 0x3a3   : > { %v1948_v32 = vadd.f32 0.5, %v1884_v27  ;;  %v1761_v33 = vmul.f32 0.5, %v1479_v28 }
 0x3a4   : > { %2013 = vst.msk [vmem:[%s3320_s20 + $0x28] sm:$0xff] %vm374_vm0, %v1949_v30  ;;  %v1760_v34 = vmul.f32 0.5, %v1474_v31 }
 0x3a5   : > { %2012 = vst.msk [vmem:[%s3320_s20 + $0x20] sm:$0xff] %vm374_vm0, %v1948_v32  ;;  %2784 = vtanh.f32 %v1761_v33 }
 0x3a6   : > { %2786 = vtanh.f32 %v1760_v34 }
 0x3a7   : > { %v2781_v35 = vpop.eup %2780 }
 0x3a8   : > { %v2783_v36 = vpop.eup %2782  ;;  %v1887_v37 = vmul.f32 0.5, %v2781_v35  ;;  %v2477_v38 = vpop.f32.mrb[18].mxu0 }
 0x3a9   : > { %v1886_v39 = vmul.f32 0.5, %v2783_v36  ;;  %v1489_v40 = vadd.f32 %v2477_v38, %v3309_v49  ;;  %v1483_v41 = vpop.f32.mrb[19].mxu0 }
 0x3aa   : > { %v1951_v42 = vadd.f32 0.5, %v1887_v37  ;;  %v1484_v43 = vadd.f32 %v3309_v49, %v1483_v41 }
 0x3ab   : > { %v1950_v44 = vadd.f32 0.5, %v1886_v39  ;;  %v1763_v45 = vmul.f32 0.5, %v1489_v40 }
 0x3ac   : > { %2015 = vst.msk [vmem:[%s3320_s20 + $0x38] sm:$0xff] %vm374_vm0, %v1951_v42  ;;  %v1762_v46 = vmul.f32 0.5, %v1484_v43 }
 0x3ad   : > { %2014 = vst.msk [vmem:[%s3320_s20 + $0x30] sm:$0xff] %vm374_vm0, %v1950_v44  ;;  %2788 = vtanh.f32 %v1763_v45 }
 0x3ae   : > { %2790 = vtanh.f32 %v1762_v46 }
 0x3af   : > { %v2785_v47 = vpop.eup %2784 }
 0x3b0   : > { %v2787_v0 = vpop.eup %2786  ;;  %v1889_v48 = vmul.f32 0.5, %v2785_v47  ;;  %v2480_v50 = vpop.f32.mrb[20].mxu0 }
 0x3b1   : > { %v1888_v51 = vmul.f32 0.5, %v2787_v0  ;;  %v1499_v1 = vadd.f32 %v2480_v50, %v3309_v49  ;;  %v1493_v52 = vpop.f32.mrb[21].mxu0 }
 0x3b2   : > { %v1953_v53 = vadd.f32 0.5, %v1889_v48  ;;  %v1494_v54 = vadd.f32 %v3309_v49, %v1493_v52 }
 0x3b3   : > { %v1952_v55 = vadd.f32 0.5, %v1888_v51  ;;  %v1765_v56 = vmul.f32 0.5, %v1499_v1 }
 0x3b4   : > { %2017 = vst.msk [vmem:[%s3320_s20 + $0x48] sm:$0xff] %vm374_vm0, %v1953_v53  ;;  %v1764_v57 = vmul.f32 0.5, %v1494_v54 }
 0x3b5   : > { %2016 = vst.msk [vmem:[%s3320_s20 + $0x40] sm:$0xff] %vm374_vm0, %v1952_v55  ;;  %2792 = vtanh.f32 %v1765_v56 }
 0x3b6   : > { %2794 = vtanh.f32 %v1764_v57 }
 0x3b7   : > { %v2789_v58 = vpop.eup %2788 }
 0x3b8   : > { %v2791_v59 = vpop.eup %2790  ;;  %v1891_v60 = vmul.f32 0.5, %v2789_v58  ;;  %v2483_v61 = vpop.f32.mrb[22].mxu0 }
 0x3b9   : > { %v1890_v62 = vmul.f32 0.5, %v2791_v59  ;;  %v1509_v63 = vadd.f32 %v2483_v61, %v3309_v49  ;;  %v1503_v2 = vpop.f32.mrb[23].mxu0 }
 0x3ba   : > { %v1955_v3 = vadd.f32 0.5, %v1891_v60  ;;  %v1504_v4 = vadd.f32 %v3309_v49, %v1503_v2 }
 0x3bb   : > { %v1954_v5 = vadd.f32 0.5, %v1890_v62  ;;  %v1767_v6 = vmul.f32 0.5, %v1509_v63 }
 0x3bc   : > { %2019 = vst.msk [vmem:[%s3320_s20 + $0x58] sm:$0xff] %vm374_vm0, %v1955_v3  ;;  %v1766_v7 = vmul.f32 0.5, %v1504_v4  ;;  %v2486_v8 = vpop.f32.mrb[24].mxu0 }
 0x3bd   : > { %2018 = vst.msk [vmem:[%s3320_s20 + $0x50] sm:$0xff] %vm374_vm0, %v1954_v5  ;;  %2796 = vtanh.f32 %v1767_v6  ;;  %v1519_v9 = vadd.f32 %v2486_v8, %v3309_v49  ;;  %v1513_v10 = vpop.f32.mrb[25].mxu0 }
 0x3be   : > { %2798 = vtanh.f32 %v1766_v7  ;;  %v1514_v11 = vadd.f32 %v3309_v49, %v1513_v10 }
 0x3bf   : > { %v2793_v12 = vpop.eup %2792  ;;  %v1769_v13 = vmul.f32 0.5, %v1519_v9 }
 0x3c0   : > { %v2795_v14 = vpop.eup %2794  ;;  %v1893_v15 = vmul.f32 0.5, %v2793_v12  ;;  %v1768_v16 = vmul.f32 0.5, %v1514_v11  ;;  %v2489_v17 = vpop.f32.mrb[26].mxu0 }
 0x3c1   : > { %v1892_v18 = vmul.f32 0.5, %v2795_v14  ;;  %2800 = vtanh.f32 %v1769_v13  ;;  %v1529_v19 = vadd.f32 %v2489_v17, %v3309_v49  ;;  %v1523_v20 = vpop.f32.mrb[27].mxu0 }
 0x3c2   : > { %v1957_v21 = vadd.f32 0.5, %v1893_v15  ;;  %2802 = vtanh.f32 %v1768_v16  ;;  %v1524_v22 = vadd.f32 %v3309_v49, %v1523_v20 }
 0x3c3   : > { %v1956_v23 = vadd.f32 0.5, %v1892_v18  ;;  %v1771_v24 = vmul.f32 0.5, %v1529_v19 }
 0x3c4   : > { %2021 = vst.msk [vmem:[%s3320_s20 + $0x68] sm:$0xff] %vm374_vm0, %v1957_v21  ;;  %v1770_v25 = vmul.f32 0.5, %v1524_v22  ;;  %v2492_v26 = vpop.f32.mrb[28].mxu0 }
 0x3c5   : > { %2020 = vst.msk [vmem:[%s3320_s20 + $0x60] sm:$0xff] %vm374_vm0, %v1956_v23  ;;  %2804 = vtanh.f32 %v1771_v24  ;;  %v1539_v27 = vadd.f32 %v2492_v26, %v3309_v49  ;;  %v1533_v28 = vpop.f32.mrb[29].mxu0 }
 0x3c6   : > { %2806 = vtanh.f32 %v1770_v25  ;;  %v1534_v29 = vadd.f32 %v3309_v49, %v1533_v28 }
 0x3c7   : > { %v2797_v30 = vpop.eup %2796  ;;  %v1773_v31 = vmul.f32 0.5, %v1539_v27 }
 0x3c8   : > { %v2799_v32 = vpop.eup %2798  ;;  %v1895_v33 = vmul.f32 0.5, %v2797_v30  ;;  %v1772_v34 = vmul.f32 0.5, %v1534_v29  ;;  %v2495_v35 = vpop.f32.mrb[30].mxu0 }
 0x3c9   : > { %v1894_v36 = vmul.f32 0.5, %v2799_v32  ;;  %2808 = vtanh.f32 %v1773_v31  ;;  %v1549_v37 = vadd.f32 %v2495_v35, %v3309_v49  ;;  %v1543_v38 = vpop.f32.mrb[31].mxu0 }
 0x3ca   : > { %v1959_v39 = vadd.f32 0.5, %v1895_v33  ;;  %2810 = vtanh.f32 %v1772_v34  ;;  %v1544_v40 = vadd.f32 %v3309_v49, %v1543_v38 }
 0x3cb   : > { %v2801_v41 = vpop.eup %2800  ;;  %v1958_v42 = vadd.f32 0.5, %v1894_v36  ;;  %v1775_v43 = vmul.f32 0.5, %v1549_v37 }
 0x3cc   : > { %v2803_v44 = vpop.eup %2802  ;;  %2023 = vst.msk [vmem:[%s3320_s20 + $0x78] sm:$0xff] %vm374_vm0, %v1959_v39  ;;  %v1897_v45 = vmul.f32 0.5, %v2801_v41  ;;  %v1774_v46 = vmul.f32 0.5, %v1544_v40  ;;  %v2498_v47 = vpop.f32.mrb[32].mxu0 }
 0x3cd   : > { %2022 = vst.msk [vmem:[%s3320_s20 + $0x70] sm:$0xff] %vm374_vm0, %v1958_v42  ;;  %v1896_v0 = vmul.f32 0.5, %v2803_v44  ;;  %2812 = vtanh.f32 %v1775_v43  ;;  %v1559_v48 = vadd.f32 %v2498_v47, %v3309_v49  ;;  %v1553_v50 = vpop.f32.mrb[33].mxu0 }
 0x3ce   : > { %v1961_v51 = vadd.f32 0.5, %v1897_v45  ;;  %2814 = vtanh.f32 %v1774_v46  ;;  %v1554_v1 = vadd.f32 %v3309_v49, %v1553_v50 }
 0x3cf   : > { %v2805_v52 = vpop.eup %2804  ;;  %v1960_v53 = vadd.f32 0.5, %v1896_v0  ;;  %v1777_v54 = vmul.f32 0.5, %v1559_v48 }
 0x3d0   : > { %v2807_v55 = vpop.eup %2806  ;;  %2025 = vst.msk [vmem:[%s3320_s20 + $0x88] sm:$0xff] %vm374_vm0, %v1961_v51  ;;  %v1899_v56 = vmul.f32 0.5, %v2805_v52  ;;  %v1776_v57 = vmul.f32 0.5, %v1554_v1  ;;  %v2501_v58 = vpop.f32.mrb[34].mxu0 }
 0x3d1   : > { %2024 = vst.msk [vmem:[%s3320_s20 + $0x80] sm:$0xff] %vm374_vm0, %v1960_v53  ;;  %v1898_v59 = vmul.f32 0.5, %v2807_v55  ;;  %2816 = vtanh.f32 %v1777_v54  ;;  %v1569_v60 = vadd.f32 %v2501_v58, %v3309_v49  ;;  %v1563_v61 = vpop.f32.mrb[35].mxu0 }
 0x3d2   : > { %v1963_v62 = vadd.f32 0.5, %v1899_v56  ;;  %2818 = vtanh.f32 %v1776_v57  ;;  %v1564_v63 = vadd.f32 %v3309_v49, %v1563_v61 }
 0x3d3   : > { %v2809_v2 = vpop.eup %2808  ;;  %v1962_v3 = vadd.f32 0.5, %v1898_v59  ;;  %v1779_v4 = vmul.f32 0.5, %v1569_v60 }
 0x3d4   : > { %v2811_v5 = vpop.eup %2810  ;;  %2027 = vst.msk [vmem:[%s3320_s20 + $0x98] sm:$0xff] %vm374_vm0, %v1963_v62  ;;  %v1901_v6 = vmul.f32 0.5, %v2809_v2  ;;  %v1778_v7 = vmul.f32 0.5, %v1564_v63  ;;  %v2504_v8 = vpop.f32.mrb[36].mxu0 }
 0x3d5   : > { %2026 = vst.msk [vmem:[%s3320_s20 + $0x90] sm:$0xff] %vm374_vm0, %v1962_v3  ;;  %v1900_v9 = vmul.f32 0.5, %v2811_v5  ;;  %2820 = vtanh.f32 %v1779_v4  ;;  %v1579_v10 = vadd.f32 %v2504_v8, %v3309_v49  ;;  %v1573_v11 = vpop.f32.mrb[37].mxu0 }
 0x3d6   : > { %v1965_v12 = vadd.f32 0.5, %v1901_v6  ;;  %2822 = vtanh.f32 %v1778_v7  ;;  %v1574_v13 = vadd.f32 %v3309_v49, %v1573_v11 }
 0x3d7   : > { %v2813_v14 = vpop.eup %2812  ;;  %v1964_v15 = vadd.f32 0.5, %v1900_v9  ;;  %v1781_v16 = vmul.f32 0.5, %v1579_v10 }
 0x3d8   : > { %v2815_v17 = vpop.eup %2814  ;;  %2029 = vst.msk [vmem:[%s3320_s20 + $0xa8] sm:$0xff] %vm374_vm0, %v1965_v12  ;;  %v1903_v18 = vmul.f32 0.5, %v2813_v14  ;;  %v1780_v19 = vmul.f32 0.5, %v1574_v13  ;;  %v2507_v20 = vpop.f32.mrb[38].mxu0 }
 0x3d9   : > { %2028 = vst.msk [vmem:[%s3320_s20 + $0xa0] sm:$0xff] %vm374_vm0, %v1964_v15  ;;  %v1902_v21 = vmul.f32 0.5, %v2815_v17  ;;  %2824 = vtanh.f32 %v1781_v16  ;;  %v1589_v22 = vadd.f32 %v2507_v20, %v3309_v49  ;;  %v1583_v23 = vpop.f32.mrb[39].mxu0 }
 0x3da   : > { %v1967_v24 = vadd.f32 0.5, %v1903_v18  ;;  %2826 = vtanh.f32 %v1780_v19  ;;  %v1584_v25 = vadd.f32 %v3309_v49, %v1583_v23 }
 0x3db   : > { %v2817_v26 = vpop.eup %2816  ;;  %v1966_v27 = vadd.f32 0.5, %v1902_v21  ;;  %v1783_v28 = vmul.f32 0.5, %v1589_v22 }
 0x3dc   : > { %v2819_v29 = vpop.eup %2818  ;;  %2031 = vst.msk [vmem:[%s3320_s20 + $0xb8] sm:$0xff] %vm374_vm0, %v1967_v24  ;;  %v1905_v30 = vmul.f32 0.5, %v2817_v26  ;;  %v1782_v31 = vmul.f32 0.5, %v1584_v25  ;;  %v2510_v32 = vpop.f32.mrb[40].mxu0 }
 0x3dd   : > { %2030 = vst.msk [vmem:[%s3320_s20 + $0xb0] sm:$0xff] %vm374_vm0, %v1966_v27  ;;  %v1904_v33 = vmul.f32 0.5, %v2819_v29  ;;  %2828 = vtanh.f32 %v1783_v28  ;;  %v1599_v34 = vadd.f32 %v2510_v32, %v3309_v49  ;;  %v1593_v35 = vpop.f32.mrb[41].mxu0 }
 0x3de   : > { %v1969_v36 = vadd.f32 0.5, %v1905_v30  ;;  %2830 = vtanh.f32 %v1782_v31  ;;  %v1594_v37 = vadd.f32 %v3309_v49, %v1593_v35 }
 0x3df   : > { %v2821_v38 = vpop.eup %2820  ;;  %v1968_v39 = vadd.f32 0.5, %v1904_v33  ;;  %v1785_v40 = vmul.f32 0.5, %v1599_v34 }
 0x3e0   : > { %v2823_v41 = vpop.eup %2822  ;;  %2033 = vst.msk [vmem:[%s3320_s20 + $0xc8] sm:$0xff] %vm374_vm0, %v1969_v36  ;;  %v1907_v42 = vmul.f32 0.5, %v2821_v38  ;;  %v1784_v43 = vmul.f32 0.5, %v1594_v37  ;;  %v2513_v44 = vpop.f32.mrb[42].mxu0 }
 0x3e1   : > { %2032 = vst.msk [vmem:[%s3320_s20 + $0xc0] sm:$0xff] %vm374_vm0, %v1968_v39  ;;  %v1906_v45 = vmul.f32 0.5, %v2823_v41  ;;  %2832 = vtanh.f32 %v1785_v40  ;;  %v1609_v46 = vadd.f32 %v2513_v44, %v3309_v49  ;;  %v1603_v47 = vpop.f32.mrb[43].mxu0 }
 0x3e2   : > { %v1971_v0 = vadd.f32 0.5, %v1907_v42  ;;  %2834 = vtanh.f32 %v1784_v43  ;;  %v1604_v48 = vadd.f32 %v3309_v49, %v1603_v47 }
 0x3e3   : > { %v2825_v50 = vpop.eup %2824  ;;  %v1970_v51 = vadd.f32 0.5, %v1906_v45  ;;  %v1787_v1 = vmul.f32 0.5, %v1609_v46 }
 0x3e4   : > { %v2827_v52 = vpop.eup %2826  ;;  %2035 = vst.msk [vmem:[%s3320_s20 + $0xd8] sm:$0xff] %vm374_vm0, %v1971_v0  ;;  %v1909_v53 = vmul.f32 0.5, %v2825_v50  ;;  %v1786_v54 = vmul.f32 0.5, %v1604_v48  ;;  %v2516_v55 = vpop.f32.mrb[44].mxu0 }
 0x3e5   : > { %2034 = vst.msk [vmem:[%s3320_s20 + $0xd0] sm:$0xff] %vm374_vm0, %v1970_v51  ;;  %v1908_v56 = vmul.f32 0.5, %v2827_v52  ;;  %2836 = vtanh.f32 %v1787_v1  ;;  %v1619_v57 = vadd.f32 %v2516_v55, %v3309_v49  ;;  %v1613_v58 = vpop.f32.mrb[45].mxu0 }
 0x3e6   : > { %v1973_v59 = vadd.f32 0.5, %v1909_v53  ;;  %2838 = vtanh.f32 %v1786_v54  ;;  %v1614_v60 = vadd.f32 %v3309_v49, %v1613_v58 }
 0x3e7   : > { %v2829_v61 = vpop.eup %2828  ;;  %v1972_v62 = vadd.f32 0.5, %v1908_v56  ;;  %v1789_v63 = vmul.f32 0.5, %v1619_v57 }
 0x3e8   : > { %v2831_v2 = vpop.eup %2830  ;;  %2037 = vst.msk [vmem:[%s3320_s20 + $0xe8] sm:$0xff] %vm374_vm0, %v1973_v59  ;;  %v1911_v3 = vmul.f32 0.5, %v2829_v61  ;;  %v1788_v4 = vmul.f32 0.5, %v1614_v60  ;;  %v2519_v5 = vpop.f32.mrb[46].mxu0 }
 0x3e9   : > { %2036 = vst.msk [vmem:[%s3320_s20 + $0xe0] sm:$0xff] %vm374_vm0, %v1972_v62  ;;  %v1910_v6 = vmul.f32 0.5, %v2831_v2  ;;  %2840 = vtanh.f32 %v1789_v63  ;;  %v1629_v7 = vadd.f32 %v2519_v5, %v3309_v49  ;;  %v1623_v8 = vpop.f32.mrb[47].mxu0 }
 0x3ea   : > { %v1975_v9 = vadd.f32 0.5, %v1911_v3  ;;  %2842 = vtanh.f32 %v1788_v4  ;;  %v1624_v10 = vadd.f32 %v3309_v49, %v1623_v8 }
 0x3eb   : > { %v2833_v11 = vpop.eup %2832  ;;  %v1974_v12 = vadd.f32 0.5, %v1910_v6  ;;  %v1791_v13 = vmul.f32 0.5, %v1629_v7 }
 0x3ec   : > { %v2835_v14 = vpop.eup %2834  ;;  %2039 = vst.msk [vmem:[%s3320_s20 + $0xf8] sm:$0xff] %vm374_vm0, %v1975_v9  ;;  %v1913_v15 = vmul.f32 0.5, %v2833_v11  ;;  %v1790_v16 = vmul.f32 0.5, %v1624_v10  ;;  %v2522_v17 = vpop.f32.mrb[48].mxu0 }
 0x3ed   : > { %2038 = vst.msk [vmem:[%s3320_s20 + $0xf0] sm:$0xff] %vm374_vm0, %v1974_v12  ;;  %v1912_v18 = vmul.f32 0.5, %v2835_v14  ;;  %2844 = vtanh.f32 %v1791_v13  ;;  %v1639_v19 = vadd.f32 %v2522_v17, %v3309_v49  ;;  %v1633_v20 = vpop.f32.mrb[49].mxu0 }
 0x3ee   : > { %v1977_v21 = vadd.f32 0.5, %v1913_v15  ;;  %2846 = vtanh.f32 %v1790_v16  ;;  %v1634_v22 = vadd.f32 %v3309_v49, %v1633_v20 }
 0x3ef   : > { %v2837_v23 = vpop.eup %2836  ;;  %v1976_v24 = vadd.f32 0.5, %v1912_v18  ;;  %v1793_v25 = vmul.f32 0.5, %v1639_v19 }
 0x3f0   : > { %v2839_v26 = vpop.eup %2838  ;;  %2041 = vst.msk [vmem:[%s3320_s20 + $0x108] sm:$0xff] %vm374_vm0, %v1977_v21  ;;  %v1915_v27 = vmul.f32 0.5, %v2837_v23  ;;  %v1792_v28 = vmul.f32 0.5, %v1634_v22  ;;  %v2525_v29 = vpop.f32.mrb[50].mxu0 }
 0x3f1   : > { %2040 = vst.msk [vmem:[%s3320_s20 + $0x100] sm:$0xff] %vm374_vm0, %v1976_v24  ;;  %v1914_v30 = vmul.f32 0.5, %v2839_v26  ;;  %2848 = vtanh.f32 %v1793_v25  ;;  %v1649_v31 = vadd.f32 %v2525_v29, %v3309_v49  ;;  %v1643_v32 = vpop.f32.mrb[51].mxu0 }
 0x3f2   : > { %v1979_v33 = vadd.f32 0.5, %v1915_v27  ;;  %2850 = vtanh.f32 %v1792_v28  ;;  %v1644_v34 = vadd.f32 %v3309_v49, %v1643_v32 }
 0x3f3   : > { %v2841_v35 = vpop.eup %2840  ;;  %v1978_v36 = vadd.f32 0.5, %v1914_v30  ;;  %v1795_v37 = vmul.f32 0.5, %v1649_v31 }
 0x3f4   : > { %v2843_v38 = vpop.eup %2842  ;;  %2043 = vst.msk [vmem:[%s3320_s20 + $0x118] sm:$0xff] %vm374_vm0, %v1979_v33  ;;  %v1917_v39 = vmul.f32 0.5, %v2841_v35  ;;  %v1794_v40 = vmul.f32 0.5, %v1644_v34  ;;  %v2528_v41 = vpop.f32.mrb[52].mxu0 }
 0x3f5   : > { %2042 = vst.msk [vmem:[%s3320_s20 + $0x110] sm:$0xff] %vm374_vm0, %v1978_v36  ;;  %v1916_v42 = vmul.f32 0.5, %v2843_v38  ;;  %2852 = vtanh.f32 %v1795_v37  ;;  %v1659_v43 = vadd.f32 %v2528_v41, %v3309_v49  ;;  %v1653_v44 = vpop.f32.mrb[53].mxu0 }
 0x3f6   : > { %v1981_v45 = vadd.f32 0.5, %v1917_v39  ;;  %2854 = vtanh.f32 %v1794_v40  ;;  %v1654_v46 = vadd.f32 %v3309_v49, %v1653_v44 }
 0x3f7   : > { %v2845_v47 = vpop.eup %2844  ;;  %v1980_v0 = vadd.f32 0.5, %v1916_v42  ;;  %v1797_v48 = vmul.f32 0.5, %v1659_v43 }
 0x3f8   : > { %v2847_v50 = vpop.eup %2846  ;;  %2045 = vst.msk [vmem:[%s3320_s20 + $0x128] sm:$0xff] %vm374_vm0, %v1981_v45  ;;  %v1919_v51 = vmul.f32 0.5, %v2845_v47  ;;  %v1796_v1 = vmul.f32 0.5, %v1654_v46  ;;  %v2531_v52 = vpop.f32.mrb[54].mxu0 }
 0x3f9   : > { %2044 = vst.msk [vmem:[%s3320_s20 + $0x120] sm:$0xff] %vm374_vm0, %v1980_v0  ;;  %v1918_v53 = vmul.f32 0.5, %v2847_v50  ;;  %2856 = vtanh.f32 %v1797_v48  ;;  %v1669_v54 = vadd.f32 %v2531_v52, %v3309_v49  ;;  %v1663_v55 = vpop.f32.mrb[55].mxu0 }
 0x3fa   : > { %v1983_v56 = vadd.f32 0.5, %v1919_v51  ;;  %2858 = vtanh.f32 %v1796_v1  ;;  %v1664_v57 = vadd.f32 %v3309_v49, %v1663_v55 }
 0x3fb   : > { %v2849_v58 = vpop.eup %2848  ;;  %v1982_v59 = vadd.f32 0.5, %v1918_v53  ;;  %v1799_v60 = vmul.f32 0.5, %v1669_v54 }
 0x3fc   : > { %v2851_v61 = vpop.eup %2850  ;;  %2047 = vst.msk [vmem:[%s3320_s20 + $0x138] sm:$0xff] %vm374_vm0, %v1983_v56  ;;  %v1921_v62 = vmul.f32 0.5, %v2849_v58  ;;  %v1798_v63 = vmul.f32 0.5, %v1664_v57  ;;  %v2534_v2 = vpop.f32.mrb[56].mxu0 }
 0x3fd   : > { %2046 = vst.msk [vmem:[%s3320_s20 + $0x130] sm:$0xff] %vm374_vm0, %v1982_v59  ;;  %v1920_v3 = vmul.f32 0.5, %v2851_v61  ;;  %2860 = vtanh.f32 %v1799_v60  ;;  %v1679_v4 = vadd.f32 %v2534_v2, %v3309_v49  ;;  %v1673_v5 = vpop.f32.mrb[57].mxu0 }
 0x3fe   : > { %v1985_v6 = vadd.f32 0.5, %v1921_v62  ;;  %2862 = vtanh.f32 %v1798_v63  ;;  %v1674_v7 = vadd.f32 %v3309_v49, %v1673_v5 }
 0x3ff   : > { %v2853_v8 = vpop.eup %2852  ;;  %v1984_v9 = vadd.f32 0.5, %v1920_v3  ;;  %v1801_v10 = vmul.f32 0.5, %v1679_v4 }
 0x400   : > { %v2855_v11 = vpop.eup %2854  ;;  %2049 = vst.msk [vmem:[%s3320_s20 + $0x148] sm:$0xff] %vm374_vm0, %v1985_v6  ;;  %v1923_v12 = vmul.f32 0.5, %v2853_v8  ;;  %v1800_v13 = vmul.f32 0.5, %v1674_v7  ;;  %v2537_v14 = vpop.f32.mrb[58].mxu0 }
 0x401   : > { %2048 = vst.msk [vmem:[%s3320_s20 + $0x140] sm:$0xff] %vm374_vm0, %v1984_v9  ;;  %v1922_v15 = vmul.f32 0.5, %v2855_v11  ;;  %2864 = vtanh.f32 %v1801_v10  ;;  %v1689_v16 = vadd.f32 %v2537_v14, %v3309_v49  ;;  %v1683_v17 = vpop.f32.mrb[59].mxu0 }
 0x402   : > { %v1987_v18 = vadd.f32 0.5, %v1923_v12  ;;  %2866 = vtanh.f32 %v1800_v13  ;;  %v1684_v19 = vadd.f32 %v3309_v49, %v1683_v17 }
 0x403   : > { %v2857_v20 = vpop.eup %2856  ;;  %v1986_v21 = vadd.f32 0.5, %v1922_v15  ;;  %v1803_v22 = vmul.f32 0.5, %v1689_v16 }
 0x404   : > { %v2859_v23 = vpop.eup %2858  ;;  %2051 = vst.msk [vmem:[%s3320_s20 + $0x158] sm:$0xff] %vm374_vm0, %v1987_v18  ;;  %v1925_v24 = vmul.f32 0.5, %v2857_v20  ;;  %v1802_v25 = vmul.f32 0.5, %v1684_v19  ;;  %v2540_v26 = vpop.f32.mrb[60].mxu0 }
 0x405   : > { %2050 = vst.msk [vmem:[%s3320_s20 + $0x150] sm:$0xff] %vm374_vm0, %v1986_v21  ;;  %v1924_v27 = vmul.f32 0.5, %v2859_v23  ;;  %2868 = vtanh.f32 %v1803_v22  ;;  %v1699_v28 = vadd.f32 %v2540_v26, %v3309_v49  ;;  %v1693_v29 = vpop.f32.mrb[61].mxu0 }
 0x406   : > { %v1989_v30 = vadd.f32 0.5, %v1925_v24  ;;  %2870 = vtanh.f32 %v1802_v25  ;;  %v1694_v31 = vadd.f32 %v3309_v49, %v1693_v29 }
 0x407   : > { %v2861_v32 = vpop.eup %2860  ;;  %v1988_v33 = vadd.f32 0.5, %v1924_v27  ;;  %v1805_v34 = vmul.f32 0.5, %v1699_v28 }
 0x408   : > { %v2863_v35 = vpop.eup %2862  ;;  %2053 = vst.msk [vmem:[%s3320_s20 + $0x168] sm:$0xff] %vm374_vm0, %v1989_v30  ;;  %v1927_v36 = vmul.f32 0.5, %v2861_v32  ;;  %v1804_v37 = vmul.f32 0.5, %v1694_v31  ;;  %v2543_v38 = vpop.f32.mrb[62].mxu0 }
 0x409   : > { %2052 = vst.msk [vmem:[%s3320_s20 + $0x160] sm:$0xff] %vm374_vm0, %v1988_v33  ;;  %v1926_v39 = vmul.f32 0.5, %v2863_v35  ;;  %2872 = vtanh.f32 %v1805_v34  ;;  %v1709_v40 = vadd.f32 %v2543_v38, %v3309_v49  ;;  %v1703_v41 = vpop.f32.mrb[63].mxu0 }
 0x40a   : > { %v1991_v42 = vadd.f32 0.5, %v1927_v36  ;;  %2874 = vtanh.f32 %v1804_v37  ;;  %v1704_v43 = vadd.f32 %v3309_v49, %v1703_v41 }
 0x40b   : > { %v2865_v44 = vpop.eup %2864  ;;  %v1990_v45 = vadd.f32 0.5, %v1926_v39  ;;  %v1807_v46 = vmul.f32 0.5, %v1709_v40 }
 0x40c   : > { %v2867_v47 = vpop.eup %2866  ;;  %2055 = vst.msk [vmem:[%s3320_s20 + $0x178] sm:$0xff] %vm374_vm0, %v1991_v42  ;;  %v1929_v0 = vmul.f32 0.5, %v2865_v44  ;;  %v1806_v48 = vmul.f32 0.5, %v1704_v43  ;;  %v2546_v50 = vpop.f32.mrb[64].mxu0 }
 0x40d   : > { %2054 = vst.msk [vmem:[%s3320_s20 + $0x170] sm:$0xff] %vm374_vm0, %v1990_v45  ;;  %v1928_v51 = vmul.f32 0.5, %v2867_v47  ;;  %2876 = vtanh.f32 %v1807_v46  ;;  %v1719_v1 = vadd.f32 %v2546_v50, %v3309_v49  ;;  %v1713_v52 = vpop.f32.mrb[65].mxu0 }
 0x40e   : > { %v1993_v53 = vadd.f32 0.5, %v1929_v0  ;;  %2878 = vtanh.f32 %v1806_v48  ;;  %v1714_v54 = vadd.f32 %v3309_v49, %v1713_v52 }
 0x40f   : > { %v2869_v55 = vpop.eup %2868  ;;  %v1992_v56 = vadd.f32 0.5, %v1928_v51  ;;  %v1809_v57 = vmul.f32 0.5, %v1719_v1 }
 0x410   : > { %v2871_v58 = vpop.eup %2870  ;;  %2057 = vst.msk [vmem:[%s3320_s20 + $0x188] sm:$0xff] %vm374_vm0, %v1993_v53  ;;  %v1931_v59 = vmul.f32 0.5, %v2869_v55  ;;  %v1808_v60 = vmul.f32 0.5, %v1714_v54  ;;  %v2549_v61 = vpop.f32.mrb[66].mxu0 }
 0x411   : > { %2056 = vst.msk [vmem:[%s3320_s20 + $0x180] sm:$0xff] %vm374_vm0, %v1992_v56  ;;  %v1930_v62 = vmul.f32 0.5, %v2871_v58  ;;  %2880 = vtanh.f32 %v1809_v57  ;;  %v1729_v63 = vadd.f32 %v2549_v61, %v3309_v49  ;;  %v1723_v2 = vpop.f32.mrb[67].mxu0 }
 0x412   : > { %v1995_v3 = vadd.f32 0.5, %v1931_v59  ;;  %2882 = vtanh.f32 %v1808_v60  ;;  %v1724_v4 = vadd.f32 %v3309_v49, %v1723_v2 }
 0x413   : > { %v2873_v5 = vpop.eup %2872  ;;  %v1994_v6 = vadd.f32 0.5, %v1930_v62  ;;  %v1811_v7 = vmul.f32 0.5, %v1729_v63 }
 0x414   : > { %v2875_v8 = vpop.eup %2874  ;;  %2059 = vst.msk [vmem:[%s3320_s20 + $0x198] sm:$0xff] %vm374_vm0, %v1995_v3  ;;  %v1933_v9 = vmul.f32 0.5, %v2873_v5  ;;  %v1810_v10 = vmul.f32 0.5, %v1724_v4  ;;  %v2552_v11 = vpop.f32.mrb[68].mxu0 }
 0x415   : > { %2058 = vst.msk [vmem:[%s3320_s20 + $0x190] sm:$0xff] %vm374_vm0, %v1994_v6  ;;  %v1932_v12 = vmul.f32 0.5, %v2875_v8  ;;  %2884 = vtanh.f32 %v1811_v7  ;;  %v1739_v13 = vadd.f32 %v2552_v11, %v3309_v49  ;;  %v1733_v14 = vpop.f32.mrb[69].mxu0 }
 0x416   : > { %v1997_v15 = vadd.f32 0.5, %v1933_v9  ;;  %2886 = vtanh.f32 %v1810_v10  ;;  %v1734_v16 = vadd.f32 %v3309_v49, %v1733_v14 }
 0x417   : > { %v2877_v17 = vpop.eup %2876  ;;  %v1996_v18 = vadd.f32 0.5, %v1932_v12  ;;  %v1813_v19 = vmul.f32 0.5, %v1739_v13 }
 0x418   : > { %v2879_v20 = vpop.eup %2878  ;;  %2061 = vst.msk [vmem:[%s3320_s20 + $0x1a8] sm:$0xff] %vm374_vm0, %v1997_v15  ;;  %v1935_v21 = vmul.f32 0.5, %v2877_v17  ;;  %v1812_v22 = vmul.f32 0.5, %v1734_v16  ;;  %v2555_v23 = vpop.f32.mrb[70].mxu0 }
 0x419   : > { %2060 = vst.msk [vmem:[%s3320_s20 + $0x1a0] sm:$0xff] %vm374_vm0, %v1996_v18  ;;  %v1934_v24 = vmul.f32 0.5, %v2879_v20  ;;  %2888 = vtanh.f32 %v1813_v19  ;;  %v1749_v25 = vadd.f32 %v2555_v23, %v3309_v49  ;;  %v1743_v26 = vpop.f32.mrb[71].mxu0 }
 0x41a   : > { %v1999_v27 = vadd.f32 0.5, %v1935_v21  ;;  %2890 = vtanh.f32 %v1812_v22  ;;  %v1744_v28 = vadd.f32 %v3309_v49, %v1743_v26 }
 0x41b   : > { %v2881_v29 = vpop.eup %2880  ;;  %v1998_v30 = vadd.f32 0.5, %v1934_v24  ;;  %v1815_v31 = vmul.f32 0.5, %v1749_v25 }
 0x41c   : > { %v2883_v32 = vpop.eup %2882  ;;  %2063 = vst.msk [vmem:[%s3320_s20 + $0x1b8] sm:$0xff] %vm374_vm0, %v1999_v27  ;;  %v1937_v33 = vmul.f32 0.5, %v2881_v29  ;;  %v1814_v34 = vmul.f32 0.5, %v1744_v28 }
 0x41d   : > { %2062 = vst.msk [vmem:[%s3320_s20 + $0x1b0] sm:$0xff] %vm374_vm0, %v1998_v30  ;;  %v1936_v35 = vmul.f32 0.5, %v2883_v32  ;;  %2892 = vtanh.f32 %v1815_v31 }
 0x41e   : > { %v2001_v36 = vadd.f32 0.5, %v1937_v33  ;;  %2894 = vtanh.f32 %v1814_v34 }
 0x41f   : > { %v2885_v37 = vpop.eup %2884  ;;  %v2000_v49 = vadd.f32 0.5, %v1936_v35 }
 0x420   : > { %v2887_v38 = vpop.eup %2886  ;;  %2065 = vst.msk [vmem:[%s3320_s20 + $0x1c8] sm:$0xff] %vm374_vm0, %v2001_v36  ;;  %v1939_v39 = vmul.f32 0.5, %v2885_v37 }
 0x421   : > { %2064 = vst.msk [vmem:[%s3320_s20 + $0x1c0] sm:$0xff] %vm374_vm0, %v2000_v49  ;;  %v1938_v40 = vmul.f32 0.5, %v2887_v38 }
 0x422   : > { %v2003_v41 = vadd.f32 0.5, %v1939_v39 }
 0x423   : > { %v2889_v42 = vpop.eup %2888  ;;  %v2002_v43 = vadd.f32 0.5, %v1938_v40 }
 0x424   : > { %v2891_v44 = vpop.eup %2890  ;;  %2067 = vst.msk [vmem:[%s3320_s20 + $0x1d8] sm:$0xff] %vm374_vm0, %v2003_v41  ;;  %v1941_v45 = vmul.f32 0.5, %v2889_v42 }
 0x425   : > { %2066 = vst.msk [vmem:[%s3320_s20 + $0x1d0] sm:$0xff] %vm374_vm0, %v2002_v43  ;;  %v1940_v46 = vmul.f32 0.5, %v2891_v44 }
 0x426   : > { %v2005_v47 = vadd.f32 0.5, %v1941_v45 }
 0x427   : > { %v2893_v0 = vpop.eup %2892  ;;  %v2004_v48 = vadd.f32 0.5, %v1940_v46 }
 0x428   : > { %v2895_v50 = vpop.eup %2894  ;;  %2069 = vst.msk [vmem:[%s3320_s20 + $0x1e8] sm:$0xff] %vm374_vm0, %v2005_v47  ;;  %v1943_v51 = vmul.f32 0.5, %v2893_v0 }
 0x429   : > { %2068 = vst.msk [vmem:[%s3320_s20 + $0x1e0] sm:$0xff] %vm374_vm0, %v2004_v48  ;;  %v1942_v1 = vmul.f32 0.5, %v2895_v50 }
 0x42a   : > { %v2007_v52 = vadd.f32 0.5, %v1943_v51 }
 0x42b   : > { %v2006_v53 = vadd.f32 0.5, %v1942_v1 }
 0x42c   : > { %2071 = vst.msk [vmem:[%s3320_s20 + $0x1f8] sm:$0xff] %vm374_vm0, %v2007_v52 }
 0x42d   : > { %2070 = vst.msk [vmem:[%s3320_s20 + $0x1f0] sm:$0xff] %vm374_vm0, %v2006_v53 }
 0x42e PF: > { %s17_s24 = sadd.s32 1, %s2902_s24  }
 0x42f   : > { %p14_p4 = scmp.ge.s32.totalorder %s17_s24, 4  }
 0x431   :  { %16 = sbr.rel (!%p14_p4) target bundleno = 1 (0x1), region = 78 }

</bundles_post_ra>
